<compile_context>
chip_gen: v6e
topology: v6e:2x2x1
jax: 0.10.0
libtpu: 0.0.40
codegen_flags: <defaults>
</compile_context>

<pallas_src>
import math
import functools

import jax
import jax.numpy as jnp
from jax import lax
from jax.experimental import pallas as pl
from jax.experimental.pallas import tpu as pltpu


def _norm_f32(x, gamma_ref, beta_ref, *, norm_type, eps):
    """LayerNorm in f32 (torch.var(unbiased=False) == mean of squares)."""
    xf = x.astype(jnp.float32)
    if norm_type == "none":
        return xf
    # TODO(synk): ScaleNorm (norm_type == "scale_norm") not wired in this wrapper.
    mu = jnp.mean(xf, axis=-1, keepdims=True)
    var = jnp.mean(jnp.square(xf - mu), axis=-1, keepdims=True)
    inv = lax.rsqrt(var + eps)
    return (gamma_ref[...].astype(jnp.float32) * (xf - mu) * inv
            + beta_ref[...].astype(jnp.float32))


def _sublayer_attn_kernel(xq_ref, xkv_ref, gamma_ref, beta_ref,
                          wq_ref, wk_ref, wv_ref, wo_ref, out_ref,
                          k_cache, v_cache, pv_stage,
                          *, num_heads, qk_dim, v_dim, pre_norm, use_resid,
                          norm_type, eps, block_q):
    """One (batch, query-tile) grid step.

    Refs:
      xq_ref    : (1, TQ, D) raw query tile (also the residual)
      xkv_ref   : (1, S,  D) raw full sequence (K/V source; read only at qi==0)
      gamma/beta: (1, D)
      wq/wk_ref : (D, H*dk) fused projection weights ((in,out) layout,
                  1/sqrt(dk) folded into Wq on the host)
      wv_ref    : (D, H*dv)
      wo_ref    : (H*dv, D) fused output projection
      out_ref   : (1, TQ, D)
      k_cache   : VMEM scratch (S, H*dk)  — persists across q tiles of a batch
      v_cache   : VMEM scratch (S, H*dv)
      pv_stage  : VMEM scratch (TQ, H*dv) — per-head PV staging for one wide Wo matmul
    """
    dtype = xq_ref.dtype
    qi = pl.program_id(1)
    tq = block_q
    block_k = block_q  # square tiles -> exactly one diagonal tile per q tile

    # ---- once per batch: normalize the full sequence, project K/V with two
    #      wide lane-dense matmuls and cache them in VMEM scratch ----
    @pl.when(qi == 0)
    def _():
        xkv = xkv_ref[0]                                              # (S, D)
        if pre_norm:
            kv_in = _norm_f32(xkv, gamma_ref, beta_ref,
                              norm_type=norm_type, eps=eps).astype(dtype)
        else:
            kv_in = xkv
        # Outputs kept in the compute dtype (MXU accumulates in f32 internally);
        # no full-S f32 intermediates.
        k_cache[...] = jnp.dot(kv_in, wk_ref[...])                    # (S, H*dk)
        v_cache[...] = jnp.dot(kv_in, wv_ref[...])                    # (S, H*dv)

    # ---- per query tile ----
    xq = xq_ref[0]                                                    # (TQ, D)
    if pre_norm:
        q_in = _norm_f32(xq, gamma_ref, beta_ref,
                         norm_type=norm_type, eps=eps).astype(dtype)
    else:
        q_in = xq
    q_all = jnp.dot(q_in, wq_ref[...])                                # (TQ, H*dk)

    # Static in-tile causal mask — only the diagonal KV tile needs it.
    diag_mask = (lax.broadcasted_iota(jnp.int32, (tq, block_k), 1)
                 <= lax.broadcasted_iota(jnp.int32, (tq, block_k), 0))

    def kv_step(kv, carry, h, masked):
        """One flash-attention (online softmax) step over KV tile `kv`, head h."""
        m, l, acc = carry
        start = pl.multiple_of(kv * block_k, block_k)
        k_t = k_cache[pl.ds(start, block_k), h * qk_dim:(h + 1) * qk_dim]
        v_t = v_cache[pl.ds(start, block_k), h * v_dim:(h + 1) * v_dim]
        q_h = q_all[:, h * qk_dim:(h + 1) * qk_dim]
        s = lax.dot_general(q_h, k_t, (((1,), (1,)), ((), ())),
                            preferred_element_type=jnp.float32)        # (TQ, BK) f32
        if masked:
            s = jnp.where(diag_mask, s, -1e30)
        m_new = jnp.maximum(m, jnp.max(s, axis=-1, keepdims=True))
        alpha = jnp.exp(m - m_new)
        p = jnp.exp(s - m_new)
        l_new = alpha * l + jnp.sum(p, axis=-1, keepdims=True)
        acc_new = alpha * acc + jnp.dot(p.astype(dtype), v_t,
                                        preferred_element_type=jnp.float32)
        return m_new, l_new, acc_new

    for h in range(num_heads):  # scores/softmax/PV are inherently per-head
        init = (jnp.full((tq, 1), -1e30, jnp.float32),
                jnp.zeros((tq, 1), jnp.float32),
                jnp.zeros((tq, v_dim), jnp.float32))
        # Tiles strictly below the diagonal: no mask needed.
        # Tiles above the diagonal: never touched (causal skip).
        m, l, acc = lax.fori_loop(
            0, qi, lambda kv, c: kv_step(kv, c, h, False), init)
        # Diagonal tile (the only one that needs masking).
        m, l, acc = kv_step(qi, (m, l, acc), h, True)
        # pl.reciprocal(approx=True) uses the EUP; small relative error, within
        # the tolerances used below (swap to exact division for strict parity).
        pv = acc * pl.reciprocal(l, approx=True)
        # TODO(synk): attention dropout (p=config.train.dropout) is identity in eval mode.
        pv_stage[:, h * v_dim:(h + 1) * v_dim] = pv.astype(dtype)

    # Deferred output projection: one (TQ, H*dv) @ (H*dv, D) matmul.
    ret = jnp.dot(pv_stage[...], wo_ref[...],
                  preferred_element_type=jnp.float32)                   # (TQ, D) f32
    # TODO(synk): output dropout (p=config.train.dropout) is identity in eval mode.
    if use_resid:
        ret = ret + xq.astype(jnp.float32)
    if not pre_norm:
        ret = _norm_f32(ret, gamma_ref, beta_ref, norm_type=norm_type, eps=eps)
    out_ref[0] = ret.astype(out_ref.dtype)


def _padded_bytes(shape, dtype):
    """Conservative VMEM footprint of a buffer after (8,128) tile padding."""
    s = list(shape)
    if len(s) >= 1:
        s[-1] = ((s[-1] + 127) // 128) * 128
    if len(s) >= 2:
        s[-2] = ((s[-2] + 7) // 8) * 8
    n = 1
    for d in s:
        n *= d
    return n * jnp.dtype(dtype).itemsize


def sublayer_connection_self_attention(x, gamma, beta, wq, wk, wv, wo, *,
                                       num_heads, pre_norm=True, use_resid=True,
                                       norm_type="layer_norm", eps=1e-5,
                                       block_q=None):
    """SublayerConnection with a causal MHA sublayer, fused into one kernel.

    x: (B, S, D). gamma/beta: (D,). wq/wk/wv: (H*dh, D), wo: (D, H*dh)
    (torch.nn.Linear convention). Returns (B, S, D) in x.dtype.
    """
    B, S, D = x.shape
    qk_dim = wq.shape[0] // num_heads
    v_dim = wv.shape[0] // num_heads

    if block_q is None:
        # v5e/v6e (128 MiB VMEM): larger q tiles amortize per-step overhead;
        # v7x (64 MiB VMEM): cap lower.
        cap = 256
        try:
            if pltpu.get_tpu_info().vmem_capacity_bytes <= 64 * 1024 * 1024:
                cap = 128
        except Exception:
            pass
        block_q = S
        for cand in (cap, 128, 64, 32, 16, 8):
            if cand <= S and S % cand == 0:
                block_q = cand
                break
    assert S % block_q == 0 and (block_q == S or block_q % 8 == 0), \
        "query tile must divide S and be a multiple of 8"
    n_q = S // block_q

    # One-time host-side layout prep: fold 1/sqrt(dk) into Wq and transpose
    # everything to (in, out) fused layouts so the kernel feeds the MXU with
    # wide lane-dense matmuls and never transposes weights in-kernel.
    scale = 1.0 / math.sqrt(qk_dim)
    wq_f = (wq * scale).T               # (D, H*dk)
    wk_f = wk.T                         # (D, H*dk)
    wv_f = wv.T                         # (D, H*dv)
    wo_f = wo.T                         # (H*dv, D)
    gamma2 = gamma.reshape(1, D)
    beta2 = beta.reshape(1, D)

    kernel = functools.partial(
        _sublayer_attn_kernel, num_heads=num_heads, qk_dim=qk_dim, v_dim=v_dim,
        pre_norm=pre_norm, use_resid=use_resid, norm_type=norm_type, eps=eps,
        block_q=block_q)

    grid_spec = pltpu.PrefetchScalarGridSpec(
        num_scalar_prefetch=0,
        grid=(B, n_q),
        in_specs=[
            # x query tile / residual (double buffered by default).
            pl.BlockSpec((1, block_q, D), lambda b, qi: (b, qi, 0)),
            # full sequence for K/V; only consumed at qi == 0 (re-fetched only
            # when the batch index changes).
            pl.BlockSpec((1, S, D), lambda b, qi: (b, 0, 0)),
            # Constant blocks: single-buffered (no pointless double-buffering).
            pl.BlockSpec((1, D), lambda b, qi: (0, 0),
                         pipeline_mode=pl.Buffered(1)),                  # gamma
            pl.BlockSpec((1, D), lambda b, qi: (0, 0),
                         pipeline_mode=pl.Buffered(1)),                  # beta
            pl.BlockSpec(wq_f.shape, lambda b, qi: (0, 0),
                         pipeline_mode=pl.Buffered(1)),                  # Wq fused
            pl.BlockSpec(wk_f.shape, lambda b, qi: (0, 0),
                         pipeline_mode=pl.Buffered(1)),                  # Wk fused
            pl.BlockSpec(wv_f.shape, lambda b, qi: (0, 0),
                         pipeline_mode=pl.Buffered(1)),                  # Wv fused
            pl.BlockSpec(wo_f.shape, lambda b, qi: (0, 0),
                         pipeline_mode=pl.Buffered(1)),                  # Wo fused
        ],
        # NOTE: for real models keep D a multiple of 128 (lane-dense stores);
        # the toy D=32 config produces masked partial stores on the epilogue.
        out_specs=pl.BlockSpec((1, block_q, D), lambda b, qi: (b, qi, 0)),
        scratch_shapes=[
            pltpu.VMEM((S, num_heads * qk_dim), x.dtype),   # K cache (per batch)
            pltpu.VMEM((S, num_heads * v_dim), x.dtype),    # V cache (per batch)
            pltpu.VMEM((block_q, num_heads * v_dim), x.dtype),  # PV staging
        ])

    # VMEM budget derived from the actual block/scratch footprint with headroom,
    # clamped so it is v7x-safe (64 MiB physical) and v5e/v6e-friendly.
    need = (2 * _padded_bytes((block_q, D), x.dtype)                 # x q tile
            + 2 * _padded_bytes((S, D), x.dtype)                     # x kv block
            + _padded_bytes((1, D), gamma2.dtype) * 2                # gamma/beta
            + _padded_bytes(wq_f.shape, wq_f.dtype)
            + _padded_bytes(wk_f.shape, wk_f.dtype)
            + _padded_bytes(wv_f.shape, wv_f.dtype)
            + _padded_bytes(wo_f.shape, wo_f.dtype)
            + 2 * _padded_bytes((block_q, D), x.dtype)               # out tile
            + _padded_bytes((S, num_heads * qk_dim), x.dtype)        # K cache
            + _padded_bytes((S, num_heads * v_dim), x.dtype)         # V cache
            + _padded_bytes((block_q, num_heads * v_dim), x.dtype))  # PV staging
    vmem_limit = int(max(16 << 20, min(48 << 20, 2 * need + (4 << 20))))

    # Advisory cost estimate (causal -> roughly half the score/PV work).
    attn_tiles = n_q * (n_q + 1) // 2
    flops = (2 * B * S * D * num_heads * (qk_dim + v_dim)                 # K/V proj (per batch)
             + 2 * B * S * D * num_heads * qk_dim                         # Q proj
             + 2 * B * S * num_heads * v_dim * D                          # out proj
             + 2 * B * num_heads * attn_tiles * block_q * block_q * (qk_dim + v_dim))
    transcendentals = B * num_heads * attn_tiles * block_q * block_q
    bytes_accessed = (3 * x.size * x.dtype.itemsize
                      + wq_f.nbytes + wk_f.nbytes + wv_f.nbytes + wo_f.nbytes
                      + gamma2.nbytes + beta2.nbytes)
    cost = pl.CostEstimate(flops=int(flops),
                           transcendentals=int(transcendentals),
                           bytes_accessed=int(bytes_accessed))

    return pl.pallas_call(
        kernel,
        out_shape=jax.ShapeDtypeStruct((B, S, D), x.dtype),
        grid_spec=grid_spec,
        compiler_params=pltpu.CompilerParams(
            # batch axis parallel (2 TCs on v7x); q axis must stay sequential
            # on one core because the K/V scratch cache is reused across q tiles.
            dimension_semantics=("parallel", "arbitrary"),
            vmem_limit_bytes=vmem_limit),
        cost_estimate=cost,
    )(x, x, gamma2, beta2, wq_f, wk_f, wv_f, wo_f)


def reference_sublayer(x, gamma, beta, wq, wk, wv, wo, *,
                       num_heads, pre_norm, use_resid, eps):
    """Pure-JAX f32 reference of SublayerConnection(causal self-attention)."""
    B, S, D = x.shape
    dk = wq.shape[0] // num_heads
    dv = wv.shape[0] // num_heads
    xf = x.astype(jnp.float32)
    wqf, wkf, wvf, wof = (w.astype(jnp.float32) for w in (wq, wk, wv, wo))

    def layernorm(t):
        mu = jnp.mean(t, -1, keepdims=True)
        var = jnp.mean((t - mu) ** 2, -1, keepdims=True)
        return gamma * (t - mu) / jnp.sqrt(var + eps) + beta

    h_in = layernorm(xf) if pre_norm else xf
    qp = (h_in @ wqf.T).reshape(B, S, num_heads, dk).transpose(0, 2, 1, 3)
    kp = (h_in @ wkf.T).reshape(B, S, num_heads, dk).transpose(0, 2, 1, 3)
    vp = (h_in @ wvf.T).reshape(B, S, num_heads, dv).transpose(0, 2, 1, 3)
    scores = jnp.einsum('bhqd,bhkd->bhqk', qp, kp) / math.sqrt(dk)
    causal = jnp.tril(jnp.ones((S, S), bool))
    scores = jnp.where(causal[None, None], scores, -1e30)
    probs = jax.nn.softmax(scores, axis=-1)
    attn = (jnp.einsum('bhqk,bhkd->bhqd', probs, vp)
            .transpose(0, 2, 1, 3).reshape(B, S, num_heads * dv))
    out = attn @ wof.T
    ret = out + xf if use_resid else out
    if not pre_norm:
        ret = layernorm(ret)
    return ret


def _make_inputs(B, S, D, num_heads, key):
    kx, kwq, kwk, kwv, kwo, kg, kb = jax.random.split(key, 7)
    qk_dim = D // num_heads
    v_dim = D // num_heads
    std = (2.0 / (5.0 * D)) ** 0.5
    wq = std * jax.random.normal(kwq, (num_heads * qk_dim, D), jnp.float32)
    wk = std * jax.random.normal(kwk, (num_heads * qk_dim, D), jnp.float32)
    wv = std * jax.random.normal(kwv, (num_heads * v_dim, D), jnp.float32)
    wo = std * jax.random.normal(kwo, (D, num_heads * v_dim), jnp.float32)
    gamma = 1.0 + 0.1 * jax.random.normal(kg, (D,), jnp.float32)
    beta = 0.1 * jax.random.normal(kb, (D,), jnp.float32)
    x = jax.random.normal(kx, (B, S, D), jnp.float32)
    return x, gamma, beta, wq, wk, wv, wo


if __name__ == "__main__":
    num_heads = 4
    eps = 1e-5

    # --- Test 1: f32, single query tile (B=2, S=8, D=32) ---
    B, S, D = 2, 8, 32
    x, gamma, beta, wq, wk, wv, wo = _make_inputs(B, S, D, num_heads,
                                                  jax.random.PRNGKey(0))
    ref = reference_sublayer(x, gamma, beta, wq, wk, wv, wo,
                             num_heads=num_heads, pre_norm=True,
                             use_resid=True, eps=eps)
    out = sublayer_connection_self_attention(
        x, gamma, beta, wq, wk, wv, wo, num_heads=num_heads,
        pre_norm=True, use_resid=True, norm_type="layer_norm", eps=eps)
    out = jax.block_until_ready(out)
    assert out.shape == (B, S, D)
    err = jnp.max(jnp.abs(out.astype(jnp.float32) - ref))
    assert jnp.allclose(out.astype(jnp.float32), ref, atol=5e-3, rtol=5e-3), \
        f"f32 single-tile max abs err {err}"

    # --- Test 2: f32, multi-tile path (S=32, block_q=8): exercises the KV-tile
    #     fori_loop, diagonal masking, causal-tile skipping and the per-batch
    #     K/V scratch cache being reused across 4 query tiles ---
    B2, S2 = 2, 32
    x2, gamma2, beta2, wq2, wk2, wv2, wo2 = _make_inputs(B2, S2, D, num_heads,
                                                         jax.random.PRNGKey(0))
    ref2 = reference_sublayer(x2, gamma2, beta2, wq2, wk2, wv2, wo2,
                              num_heads=num_heads, pre_norm=True,
                              use_resid=True, eps=eps)
    out2 = sublayer_connection_self_attention(
        x2, gamma2, beta2, wq2, wk2, wv2, wo2, num_heads=num_heads,
        pre_norm=True, use_resid=True, norm_type="layer_norm", eps=eps,
        block_q=8)
    out2 = jax.block_until_ready(out2)
    err2 = jnp.max(jnp.abs(out2.astype(jnp.float32) - ref2))
    assert jnp.allclose(out2.astype(jnp.float32), ref2, atol=5e-3, rtol=5e-3), \
        f"f32 multi-tile max abs err {err2}"

    # --- Test 3: bf16 path (MXU fed bf16 operands, f32 softmax/accumulation) ---
    xb = x.astype(jnp.bfloat16)
    wqb, wkb, wvb, wob = (w.astype(jnp.bfloat16) for w in (wq, wk, wv, wo))
    ref_b = reference_sublayer(xb, gamma, beta, wqb, wkb, wvb, wob,
                               num_heads=num_heads, pre_norm=True,
                               use_resid=True, eps=eps)
    out_b = sublayer_connection_self_attention(
        xb, gamma, beta, wqb, wkb, wvb, wob, num_heads=num_heads,
        pre_norm=True, use_resid=True, norm_type="layer_norm", eps=eps)
    out_b = jax.block_until_ready(out_b)
    err_b = jnp.max(jnp.abs(out_b.astype(jnp.float32) - ref_b))
    assert jnp.allclose(out_b.astype(jnp.float32), ref_b, atol=5e-2, rtol=5e-2), \
        f"bf16 max abs err {err_b}"

    print("KERNEL_OK")
</pallas_src>

<mosaic_0001>
module attributes {stable_mosaic.version = 11 : i64} {
  func.func @_sublayer_attn_kernel(%arg0: i32, %arg1: i32, %arg2: memref<1x8x32xf32, #tpu.memory_space<vmem>>, %arg3: memref<1x8x32xf32, #tpu.memory_space<vmem>>, %arg4: memref<1x32xf32, #tpu.memory_space<vmem>>, %arg5: memref<1x32xf32, #tpu.memory_space<vmem>>, %arg6: memref<32x32xf32, #tpu.memory_space<vmem>>, %arg7: memref<32x32xf32, #tpu.memory_space<vmem>>, %arg8: memref<32x32xf32, #tpu.memory_space<vmem>>, %arg9: memref<32x32xf32, #tpu.memory_space<vmem>>, %arg10: memref<1x8x32xf32, #tpu.memory_space<vmem>>, %arg11: memref<8x32xf32, #tpu.memory_space<vmem>>, %arg12: memref<8x32xf32, #tpu.memory_space<vmem>>, %arg13: memref<8x32xf32, #tpu.memory_space<vmem>>) attributes {dimension_semantics = [#tpu.dimension_semantics<parallel>, #tpu.dimension_semantics<arbitrary>], iteration_bounds = array<i64: 2, 1>, scalar_prefetch = 0 : i64, scratch_operands = 3 : i64, tpu.core_type = #tpu.core_type<tc>, window_params = [{transform_indices = @transform_0, window_bounds = array<i64: 1, 8, 32>}, {transform_indices = @transform_1, window_bounds = array<i64: 1, 8, 32>}, {pipeline_mode = #tpu.pipeline_mode<synchronous>, transform_indices = @transform_2, window_bounds = array<i64: 1, 32>}, {pipeline_mode = #tpu.pipeline_mode<synchronous>, transform_indices = @transform_3, window_bounds = array<i64: 1, 32>}, {pipeline_mode = #tpu.pipeline_mode<synchronous>, transform_indices = @transform_4, window_bounds = array<i64: 32, 32>}, {pipeline_mode = #tpu.pipeline_mode<synchronous>, transform_indices = @transform_5, window_bounds = array<i64: 32, 32>}, {pipeline_mode = #tpu.pipeline_mode<synchronous>, transform_indices = @transform_6, window_bounds = array<i64: 32, 32>}, {pipeline_mode = #tpu.pipeline_mode<synchronous>, transform_indices = @transform_7, window_bounds = array<i64: 32, 32>}, {transform_indices = @transform_8, window_bounds = array<i64: 1, 8, 32>}]} {
    %c0_i32 = arith.constant 0 : i32
    %0 = arith.cmpi eq, %arg1, %c0_i32 : i32
    %1 = arith.extui %0 : i1 to i32
    %c0_i32_0 = arith.constant 0 : i32
    %2 = arith.cmpi ne, %1, %c0_i32_0 : i32
    scf.if %2 {
      %c0_77 = arith.constant 0 : index
      %c0_78 = arith.constant 0 : index
      %c0_79 = arith.constant 0 : index
      %185 = vector.load %arg3[%c0_77, %c0_78, %c0_79] : memref<1x8x32xf32, #tpu.memory_space<vmem>>, vector<1x8x32xf32>
      %186 = vector.shape_cast %185 : vector<1x8x32xf32> to vector<8x32xf32>
      %cst_80 = arith.constant dense<0.000000e+00> : vector<8xf32>
      %187 = vector.multi_reduction <add>, %186, %cst_80 [1] : vector<8x32xf32> to vector<8xf32>
      %188 = vector.shape_cast %187 : vector<8xf32> to vector<8x1xf32>
      %cst_81 = arith.constant 3.200000e+01 : f32
      %189 = vector.broadcast %cst_81 : f32 to vector<8x1xf32>
      %190 = arith.divf %188, %189 : vector<8x1xf32>
      %191 = vector.broadcast %190 : vector<8x1xf32> to vector<8x32xf32>
      %192 = arith.subf %186, %191 : vector<8x32xf32>
      %193 = arith.mulf %192, %192 : vector<8x32xf32>
      %cst_82 = arith.constant dense<0.000000e+00> : vector<8xf32>
      %194 = vector.multi_reduction <add>, %193, %cst_82 [1] : vector<8x32xf32> to vector<8xf32>
      %195 = vector.shape_cast %194 : vector<8xf32> to vector<8x1xf32>
      %cst_83 = arith.constant 3.200000e+01 : f32
      %196 = vector.broadcast %cst_83 : f32 to vector<8x1xf32>
      %197 = arith.divf %195, %196 : vector<8x1xf32>
      %cst_84 = arith.constant 9.99999974E-6 : f32
      %198 = vector.broadcast %cst_84 : f32 to vector<8x1xf32>
      %199 = arith.addf %197, %198 : vector<8x1xf32>
      %200 = math.rsqrt %199 : vector<8x1xf32>
      %c0_85 = arith.constant 0 : index
      %c0_86 = arith.constant 0 : index
      %201 = vector.load %arg4[%c0_85, %c0_86] : memref<1x32xf32, #tpu.memory_space<vmem>>, vector<1x32xf32>
      %202 = vector.broadcast %190 : vector<8x1xf32> to vector<8x32xf32>
      %203 = arith.subf %186, %202 : vector<8x32xf32>
      %204 = vector.broadcast %201 : vector<1x32xf32> to vector<8x32xf32>
      %205 = arith.mulf %204, %203 : vector<8x32xf32>
      %206 = vector.broadcast %200 : vector<8x1xf32> to vector<8x32xf32>
      %207 = arith.mulf %205, %206 : vector<8x32xf32>
      %c0_87 = arith.constant 0 : index
      %c0_88 = arith.constant 0 : index
      %208 = vector.load %arg5[%c0_87, %c0_88] : memref<1x32xf32, #tpu.memory_space<vmem>>, vector<1x32xf32>
      %209 = vector.broadcast %208 : vector<1x32xf32> to vector<8x32xf32>
      %210 = arith.addf %207, %209 : vector<8x32xf32>
      %c0_89 = arith.constant 0 : index
      %c0_90 = arith.constant 0 : index
      %211 = vector.load %arg7[%c0_89, %c0_90] : memref<32x32xf32, #tpu.memory_space<vmem>>, vector<32x32xf32>
      %cst_91 = arith.constant dense<0.000000e+00> : vector<8x32xf32>
      %212 = tpu.matmul %210, %211, %cst_91 {dimension_numbers = #tpu.dot_dimension_numbers<[1], [0], [0], [1], [0, 0, 1, 1], [], []>} : vector<8x32xf32>, vector<32x32xf32>, vector<8x32xf32> -> vector<8x32xf32>
      %c0_92 = arith.constant 0 : index
      %c0_93 = arith.constant 0 : index
      %213 = vector.load %arg11[%c0_92, %c0_93] : memref<8x32xf32, #tpu.memory_space<vmem>>, vector<8x32xf32>
      tpu.vector_store %arg11[%c0_92, %c0_93], %212 {strides = array<i32>} : memref<8x32xf32, #tpu.memory_space<vmem>>, vector<8x32xf32>,
      %c0_94 = arith.constant 0 : index
      %c0_95 = arith.constant 0 : index
      %214 = vector.load %arg8[%c0_94, %c0_95] : memref<32x32xf32, #tpu.memory_space<vmem>>, vector<32x32xf32>
      %cst_96 = arith.constant dense<0.000000e+00> : vector<8x32xf32>
      %215 = tpu.matmul %210, %214, %cst_96 {dimension_numbers = #tpu.dot_dimension_numbers<[1], [0], [0], [1], [0, 0, 1, 1], [], []>} : vector<8x32xf32>, vector<32x32xf32>, vector<8x32xf32> -> vector<8x32xf32>
      %c0_97 = arith.constant 0 : index
      %c0_98 = arith.constant 0 : index
      %216 = vector.load %arg12[%c0_97, %c0_98] : memref<8x32xf32, #tpu.memory_space<vmem>>, vector<8x32xf32>
      tpu.vector_store %arg12[%c0_97, %c0_98], %215 {strides = array<i32>} : memref<8x32xf32, #tpu.memory_space<vmem>>, vector<8x32xf32>,
    } else {
    }
    %c0 = arith.constant 0 : index
    %c0_1 = arith.constant 0 : index
    %c0_2 = arith.constant 0 : index
    %3 = vector.load %arg2[%c0, %c0_1, %c0_2] : memref<1x8x32xf32, #tpu.memory_space<vmem>>, vector<1x8x32xf32>
    %4 = vector.shape_cast %3 : vector<1x8x32xf32> to vector<8x32xf32>
    %cst = arith.constant dense<0.000000e+00> : vector<8xf32>
    %5 = vector.multi_reduction <add>, %4, %cst [1] : vector<8x32xf32> to vector<8xf32>
    %6 = vector.shape_cast %5 : vector<8xf32> to vector<8x1xf32>
    %cst_3 = arith.constant 3.200000e+01 : f32
    %7 = vector.broadcast %cst_3 : f32 to vector<8x1xf32>
    %8 = arith.divf %6, %7 : vector<8x1xf32>
    %9 = vector.broadcast %8 : vector<8x1xf32> to vector<8x32xf32>
    %10 = arith.subf %4, %9 : vector<8x32xf32>
    %11 = arith.mulf %10, %10 : vector<8x32xf32>
    %cst_4 = arith.constant dense<0.000000e+00> : vector<8xf32>
    %12 = vector.multi_reduction <add>, %11, %cst_4 [1] : vector<8x32xf32> to vector<8xf32>
    %13 = vector.shape_cast %12 : vector<8xf32> to vector<8x1xf32>
    %cst_5 = arith.constant 3.200000e+01 : f32
    %14 = vector.broadcast %cst_5 : f32 to vector<8x1xf32>
    %15 = arith.divf %13, %14 : vector<8x1xf32>
    %cst_6 = arith.constant 9.99999974E-6 : f32
    %16 = vector.broadcast %cst_6 : f32 to vector<8x1xf32>
    %17 = arith.addf %15, %16 : vector<8x1xf32>
    %18 = math.rsqrt %17 : vector<8x1xf32>
    %c0_7 = arith.constant 0 : index
    %c0_8 = arith.constant 0 : index
    %19 = vector.load %arg4[%c0_7, %c0_8] : memref<1x32xf32, #tpu.memory_space<vmem>>, vector<1x32xf32>
    %20 = vector.broadcast %8 : vector<8x1xf32> to vector<8x32xf32>
    %21 = arith.subf %4, %20 : vector<8x32xf32>
    %22 = vector.broadcast %19 : vector<1x32xf32> to vector<8x32xf32>
    %23 = arith.mulf %22, %21 : vector<8x32xf32>
    %24 = vector.broadcast %18 : vector<8x1xf32> to vector<8x32xf32>
    %25 = arith.mulf %23, %24 : vector<8x32xf32>
    %c0_9 = arith.constant 0 : index
    %c0_10 = arith.constant 0 : index
    %26 = vector.load %arg5[%c0_9, %c0_10] : memref<1x32xf32, #tpu.memory_space<vmem>>, vector<1x32xf32>
    %27 = vector.broadcast %26 : vector<1x32xf32> to vector<8x32xf32>
    %28 = arith.addf %25, %27 : vector<8x32xf32>
    %c0_11 = arith.constant 0 : index
    %c0_12 = arith.constant 0 : index
    %29 = vector.load %arg6[%c0_11, %c0_12] : memref<32x32xf32, #tpu.memory_space<vmem>>, vector<32x32xf32>
    %cst_13 = arith.constant dense<0.000000e+00> : vector<8x32xf32>
    %30 = tpu.matmul %28, %29, %cst_13 {dimension_numbers = #tpu.dot_dimension_numbers<[1], [0], [0], [1], [0, 0, 1, 1], [], []>} : vector<8x32xf32>, vector<32x32xf32>, vector<8x32xf32> -> vector<8x32xf32>
    %31 = tpu.iota {dimensions = array<i32: 1>} : vector<8x8xi32>
    %32 = tpu.iota {dimensions = array<i32: 0>} : vector<8x8xi32>
    %33 = arith.cmpi sle, %31, %32 : vector<8x8xi32>
    %cst_14 = arith.constant -1.000000e+30 : f32
    %34 = vector.broadcast %cst_14 : f32 to vector<8x1xf32>
    %cst_15 = arith.constant 0.000000e+00 : f32
    %35 = vector.broadcast %cst_15 : f32 to vector<8x1xf32>
    %cst_16 = arith.constant 0.000000e+00 : f32
    %36 = vector.broadcast %cst_16 : f32 to vector<8x8xf32>
    %c0_i32_17 = arith.constant 0 : i32
    %37 = arith.subi %arg1, %c0_i32_17 : i32
    %38 = arith.addi %c0_i32_17, %37 : i32
    %c1_i32 = arith.constant 1 : i32
    %39:3 = scf.for %arg14 = %c0_i32_17 to %38 step %c1_i32 iter_args(%arg15 = %34, %arg16 = %35, %arg17 = %36) -> (vector<8x1xf32>, vector<8x1xf32>, vector<8x8xf32>)  : i32 {
      %c8_i32_77 = arith.constant 8 : i32
      %185 = arith.muli %arg14, %c8_i32_77 : i32
      %186 = tpu.assume_multiple %185, 8 : i32
      %187 = arith.index_cast %186 : i32 to index
      %c0_78 = arith.constant 0 : index
      %188 = vector.load %arg11[%187, %c0_78] : memref<8x32xf32, #tpu.memory_space<vmem>>, vector<8x8xf32>
      %189 = arith.index_cast %186 : i32 to index
      %c0_79 = arith.constant 0 : index
      %190 = vector.load %arg12[%189, %c0_79] : memref<8x32xf32, #tpu.memory_space<vmem>>, vector<8x8xf32>
      %191 = vector.extract_strided_slice %30 {offsets = [0, 0], sizes = [8, 8], strides = [1, 1]} : vector<8x32xf32> to vector<8x8xf32>
      %cst_80 = arith.constant dense<0.000000e+00> : vector<8x8xf32>
      %192 = tpu.matmul %191, %188, %cst_80 {dimension_numbers = #tpu.dot_dimension_numbers<[1], [1], [0], [0], [0, 0, 1, 0], [], []>} : vector<8x8xf32>, vector<8x8xf32>, vector<8x8xf32> -> vector<8x8xf32>
      %cst_81 = arith.constant dense<0xFF800000> : vector<8xf32>
      %193 = vector.multi_reduction <maximumf>, %192, %cst_81 [1] : vector<8x8xf32> to vector<8xf32>
      %194 = vector.shape_cast %193 : vector<8xf32> to vector<8x1xf32>
      %195 = arith.maximumf %arg15, %194 : vector<8x1xf32>
      %196 = arith.subf %arg15, %195 : vector<8x1xf32>
      %197 = math.exp %196 : vector<8x1xf32>
      %198 = vector.broadcast %195 : vector<8x1xf32> to vector<8x8xf32>
      %199 = arith.subf %192, %198 : vector<8x8xf32>
      %200 = math.exp %199 : vector<8x8xf32>
      %201 = arith.mulf %197, %arg16 : vector<8x1xf32>
      %cst_82 = arith.constant dense<0.000000e+00> : vector<8xf32>
      %202 = vector.multi_reduction <add>, %200, %cst_82 [1] : vector<8x8xf32> to vector<8xf32>
      %203 = vector.shape_cast %202 : vector<8xf32> to vector<8x1xf32>
      %204 = arith.addf %201, %203 : vector<8x1xf32>
      %205 = vector.broadcast %197 : vector<8x1xf32> to vector<8x8xf32>
      %206 = arith.mulf %205, %arg17 : vector<8x8xf32>
      %cst_83 = arith.constant dense<0.000000e+00> : vector<8x8xf32>
      %207 = tpu.matmul %200, %190, %cst_83 {dimension_numbers = #tpu.dot_dimension_numbers<[1], [0], [0], [1], [0, 0, 1, 1], [], []>} : vector<8x8xf32>, vector<8x8xf32>, vector<8x8xf32> -> vector<8x8xf32>
      %208 = arith.addf %206, %207 : vector<8x8xf32>
      scf.yield %195, %204, %208 : vector<8x1xf32>, vector<8x1xf32>, vector<8x8xf32>
    }
    %c8_i32 = arith.constant 8 : i32
    %40 = arith.muli %arg1, %c8_i32 : i32
    %41 = tpu.assume_multiple %40, 8 : i32
    %42 = arith.index_cast %41 : i32 to index
    %c0_18 = arith.constant 0 : index
    %43 = vector.load %arg11[%42, %c0_18] : memref<8x32xf32, #tpu.memory_space<vmem>>, vector<8x8xf32>
    %44 = arith.index_cast %41 : i32 to index
    %c0_19 = arith.constant 0 : index
    %45 = vector.load %arg12[%44, %c0_19] : memref<8x32xf32, #tpu.memory_space<vmem>>, vector<8x8xf32>
    %46 = vector.extract_strided_slice %30 {offsets = [0, 0], sizes = [8, 8], strides = [1, 1]} : vector<8x32xf32> to vector<8x8xf32>
    %cst_20 = arith.constant dense<0.000000e+00> : vector<8x8xf32>
    %47 = tpu.matmul %46, %43, %cst_20 {dimension_numbers = #tpu.dot_dimension_numbers<[1], [1], [0], [0], [0, 0, 1, 0], [], []>} : vector<8x8xf32>, vector<8x8xf32>, vector<8x8xf32> -> vector<8x8xf32>
    %cst_21 = arith.constant -1.000000e+30 : f32
    %48 = vector.broadcast %cst_21 : f32 to vector<8x8xf32>
    %49 = arith.select %33, %47, %48 : vector<8x8xi1>, vector<8x8xf32>
    %cst_22 = arith.constant dense<0xFF800000> : vector<8xf32>
    %50 = vector.multi_reduction <maximumf>, %49, %cst_22 [1] : vector<8x8xf32> to vector<8xf32>
    %51 = vector.shape_cast %50 : vector<8xf32> to vector<8x1xf32>
    %52 = arith.maximumf %39#0, %51 : vector<8x1xf32>
    %53 = arith.subf %39#0, %52 : vector<8x1xf32>
    %54 = math.exp %53 : vector<8x1xf32>
    %55 = vector.broadcast %52 : vector<8x1xf32> to vector<8x8xf32>
    %56 = arith.subf %49, %55 : vector<8x8xf32>
    %57 = math.exp %56 : vector<8x8xf32>
    %58 = arith.mulf %54, %39#1 : vector<8x1xf32>
    %cst_23 = arith.constant dense<0.000000e+00> : vector<8xf32>
    %59 = vector.multi_reduction <add>, %57, %cst_23 [1] : vector<8x8xf32> to vector<8xf32>
    %60 = vector.shape_cast %59 : vector<8xf32> to vector<8x1xf32>
    %61 = arith.addf %58, %60 : vector<8x1xf32>
    %62 = vector.broadcast %54 : vector<8x1xf32> to vector<8x8xf32>
    %63 = arith.mulf %62, %39#2 : vector<8x8xf32>
    %cst_24 = arith.constant dense<0.000000e+00> : vector<8x8xf32>
    %64 = tpu.matmul %57, %45, %cst_24 {dimension_numbers = #tpu.dot_dimension_numbers<[1], [0], [0], [1], [0, 0, 1, 1], [], []>} : vector<8x8xf32>, vector<8x8xf32>, vector<8x8xf32> -> vector<8x8xf32>
    %65 = arith.addf %63, %64 : vector<8x8xf32>
    %66 = tpu.reciprocal %61 {approx = true} : vector<8x1xf32> -> vector<8x1xf32>
    %67 = vector.broadcast %66 : vector<8x1xf32> to vector<8x8xf32>
    %68 = arith.mulf %65, %67 : vector<8x8xf32>
    %c0_25 = arith.constant 0 : index
    %c0_26 = arith.constant 0 : index
    %69 = vector.load %arg13[%c0_25, %c0_26] : memref<8x32xf32, #tpu.memory_space<vmem>>, vector<8x8xf32>
    tpu.vector_store %arg13[%c0_25, %c0_26], %68 {strides = array<i32>} : memref<8x32xf32, #tpu.memory_space<vmem>>, vector<8x8xf32>,
    %cst_27 = arith.constant -1.000000e+30 : f32
    %70 = vector.broadcast %cst_27 : f32 to vector<8x1xf32>
    %cst_28 = arith.constant 0.000000e+00 : f32
    %71 = vector.broadcast %cst_28 : f32 to vector<8x1xf32>
    %cst_29 = arith.constant 0.000000e+00 : f32
    %72 = vector.broadcast %cst_29 : f32 to vector<8x8xf32>
    %c0_i32_30 = arith.constant 0 : i32
    %73 = arith.subi %arg1, %c0_i32_30 : i32
    %74 = arith.addi %c0_i32_30, %73 : i32
    %c1_i32_31 = arith.constant 1 : i32
    %75:3 = scf.for %arg14 = %c0_i32_30 to %74 step %c1_i32_31 iter_args(%arg15 = %70, %arg16 = %71, %arg17 = %72) -> (vector<8x1xf32>, vector<8x1xf32>, vector<8x8xf32>)  : i32 {
      %c8_i32_77 = arith.constant 8 : i32
      %185 = arith.muli %arg14, %c8_i32_77 : i32
      %186 = tpu.assume_multiple %185, 8 : i32
      %187 = arith.index_cast %186 : i32 to index
      %c8_78 = arith.constant 8 : index
      %188 = vector.load %arg11[%187, %c8_78] : memref<8x32xf32, #tpu.memory_space<vmem>>, vector<8x8xf32>
      %189 = arith.index_cast %186 : i32 to index
      %c8_79 = arith.constant 8 : index
      %190 = vector.load %arg12[%189, %c8_79] : memref<8x32xf32, #tpu.memory_space<vmem>>, vector<8x8xf32>
      %191 = vector.extract_strided_slice %30 {offsets = [0, 8], sizes = [8, 8], strides = [1, 1]} : vector<8x32xf32> to vector<8x8xf32>
      %cst_80 = arith.constant dense<0.000000e+00> : vector<8x8xf32>
      %192 = tpu.matmul %191, %188, %cst_80 {dimension_numbers = #tpu.dot_dimension_numbers<[1], [1], [0], [0], [0, 0, 1, 0], [], []>} : vector<8x8xf32>, vector<8x8xf32>, vector<8x8xf32> -> vector<8x8xf32>
      %cst_81 = arith.constant dense<0xFF800000> : vector<8xf32>
      %193 = vector.multi_reduction <maximumf>, %192, %cst_81 [1] : vector<8x8xf32> to vector<8xf32>
      %194 = vector.shape_cast %193 : vector<8xf32> to vector<8x1xf32>
      %195 = arith.maximumf %arg15, %194 : vector<8x1xf32>
      %196 = arith.subf %arg15, %195 : vector<8x1xf32>
      %197 = math.exp %196 : vector<8x1xf32>
      %198 = vector.broadcast %195 : vector<8x1xf32> to vector<8x8xf32>
      %199 = arith.subf %192, %198 : vector<8x8xf32>
      %200 = math.exp %199 : vector<8x8xf32>
      %201 = arith.mulf %197, %arg16 : vector<8x1xf32>
      %cst_82 = arith.constant dense<0.000000e+00> : vector<8xf32>
      %202 = vector.multi_reduction <add>, %200, %cst_82 [1] : vector<8x8xf32> to vector<8xf32>
      %203 = vector.shape_cast %202 : vector<8xf32> to vector<8x1xf32>
      %204 = arith.addf %201, %203 : vector<8x1xf32>
      %205 = vector.broadcast %197 : vector<8x1xf32> to vector<8x8xf32>
      %206 = arith.mulf %205, %arg17 : vector<8x8xf32>
      %cst_83 = arith.constant dense<0.000000e+00> : vector<8x8xf32>
      %207 = tpu.matmul %200, %190, %cst_83 {dimension_numbers = #tpu.dot_dimension_numbers<[1], [0], [0], [1], [0, 0, 1, 1], [], []>} : vector<8x8xf32>, vector<8x8xf32>, vector<8x8xf32> -> vector<8x8xf32>
      %208 = arith.addf %206, %207 : vector<8x8xf32>
      scf.yield %195, %204, %208 : vector<8x1xf32>, vector<8x1xf32>, vector<8x8xf32>
    }
    %c8_i32_32 = arith.constant 8 : i32
    %76 = arith.muli %arg1, %c8_i32_32 : i32
    %77 = tpu.assume_multiple %76, 8 : i32
    %78 = arith.index_cast %77 : i32 to index
    %c8 = arith.constant 8 : index
    %79 = vector.load %arg11[%78, %c8] : memref<8x32xf32, #tpu.memory_space<vmem>>, vector<8x8xf32>
    %80 = arith.index_cast %77 : i32 to index
    %c8_33 = arith.constant 8 : index
    %81 = vector.load %arg12[%80, %c8_33] : memref<8x32xf32, #tpu.memory_space<vmem>>, vector<8x8xf32>
    %82 = vector.extract_strided_slice %30 {offsets = [0, 8], sizes = [8, 8], strides = [1, 1]} : vector<8x32xf32> to vector<8x8xf32>
    %cst_34 = arith.constant dense<0.000000e+00> : vector<8x8xf32>
    %83 = tpu.matmul %82, %79, %cst_34 {dimension_numbers = #tpu.dot_dimension_numbers<[1], [1], [0], [0], [0, 0, 1, 0], [], []>} : vector<8x8xf32>, vector<8x8xf32>, vector<8x8xf32> -> vector<8x8xf32>
    %cst_35 = arith.constant -1.000000e+30 : f32
    %84 = vector.broadcast %cst_35 : f32 to vector<8x8xf32>
    %85 = arith.select %33, %83, %84 : vector<8x8xi1>, vector<8x8xf32>
    %cst_36 = arith.constant dense<0xFF800000> : vector<8xf32>
    %86 = vector.multi_reduction <maximumf>, %85, %cst_36 [1] : vector<8x8xf32> to vector<8xf32>
    %87 = vector.shape_cast %86 : vector<8xf32> to vector<8x1xf32>
    %88 = arith.maximumf %75#0, %87 : vector<8x1xf32>
    %89 = arith.subf %75#0, %88 : vector<8x1xf32>
    %90 = math.exp %89 : vector<8x1xf32>
    %91 = vector.broadcast %88 : vector<8x1xf32> to vector<8x8xf32>
    %92 = arith.subf %85, %91 : vector<8x8xf32>
    %93 = math.exp %92 : vector<8x8xf32>
    %94 = arith.mulf %90, %75#1 : vector<8x1xf32>
    %cst_37 = arith.constant dense<0.000000e+00> : vector<8xf32>
    %95 = vector.multi_reduction <add>, %93, %cst_37 [1] : vector<8x8xf32> to vector<8xf32>
    %96 = vector.shape_cast %95 : vector<8xf32> to vector<8x1xf32>
    %97 = arith.addf %94, %96 : vector<8x1xf32>
    %98 = vector.broadcast %90 : vector<8x1xf32> to vector<8x8xf32>
    %99 = arith.mulf %98, %75#2 : vector<8x8xf32>
    %cst_38 = arith.constant dense<0.000000e+00> : vector<8x8xf32>
    %100 = tpu.matmul %93, %81, %cst_38 {dimension_numbers = #tpu.dot_dimension_numbers<[1], [0], [0], [1], [0, 0, 1, 1], [], []>} : vector<8x8xf32>, vector<8x8xf32>, vector<8x8xf32> -> vector<8x8xf32>
    %101 = arith.addf %99, %100 : vector<8x8xf32>
    %102 = tpu.reciprocal %97 {approx = true} : vector<8x1xf32> -> vector<8x1xf32>
    %103 = vector.broadcast %102 : vector<8x1xf32> to vector<8x8xf32>
    %104 = arith.mulf %101, %103 : vector<8x8xf32>
    %c0_39 = arith.constant 0 : index
    %c8_40 = arith.constant 8 : index
    %105 = vector.load %arg13[%c0_39, %c8_40] : memref<8x32xf32, #tpu.memory_space<vmem>>, vector<8x8xf32>
    tpu.vector_store %arg13[%c0_39, %c8_40], %104 {strides = array<i32>} : memref<8x32xf32, #tpu.memory_space<vmem>>, vector<8x8xf32>,
    %cst_41 = arith.constant -1.000000e+30 : f32
    %106 = vector.broadcast %cst_41 : f32 to vector<8x1xf32>
    %cst_42 = arith.constant 0.000000e+00 : f32
    %107 = vector.broadcast %cst_42 : f32 to vector<8x1xf32>
    %cst_43 = arith.constant 0.000000e+00 : f32
    %108 = vector.broadcast %cst_43 : f32 to vector<8x8xf32>
    %c0_i32_44 = arith.constant 0 : i32
    %109 = arith.subi %arg1, %c0_i32_44 : i32
    %110 = arith.addi %c0_i32_44, %109 : i32
    %c1_i32_45 = arith.constant 1 : i32
    %111:3 = scf.for %arg14 = %c0_i32_44 to %110 step %c1_i32_45 iter_args(%arg15 = %106, %arg16 = %107, %arg17 = %108) -> (vector<8x1xf32>, vector<8x1xf32>, vector<8x8xf32>)  : i32 {
      %c8_i32_77 = arith.constant 8 : i32
      %185 = arith.muli %arg14, %c8_i32_77 : i32
      %186 = tpu.assume_multiple %185, 8 : i32
      %187 = arith.index_cast %186 : i32 to index
      %c16_78 = arith.constant 16 : index
      %188 = vector.load %arg11[%187, %c16_78] : memref<8x32xf32, #tpu.memory_space<vmem>>, vector<8x8xf32>
      %189 = arith.index_cast %186 : i32 to index
      %c16_79 = arith.constant 16 : index
      %190 = vector.load %arg12[%189, %c16_79] : memref<8x32xf32, #tpu.memory_space<vmem>>, vector<8x8xf32>
      %191 = vector.extract_strided_slice %30 {offsets = [0, 16], sizes = [8, 8], strides = [1, 1]} : vector<8x32xf32> to vector<8x8xf32>
      %cst_80 = arith.constant dense<0.000000e+00> : vector<8x8xf32>
      %192 = tpu.matmul %191, %188, %cst_80 {dimension_numbers = #tpu.dot_dimension_numbers<[1], [1], [0], [0], [0, 0, 1, 0], [], []>} : vector<8x8xf32>, vector<8x8xf32>, vector<8x8xf32> -> vector<8x8xf32>
      %cst_81 = arith.constant dense<0xFF800000> : vector<8xf32>
      %193 = vector.multi_reduction <maximumf>, %192, %cst_81 [1] : vector<8x8xf32> to vector<8xf32>
      %194 = vector.shape_cast %193 : vector<8xf32> to vector<8x1xf32>
      %195 = arith.maximumf %arg15, %194 : vector<8x1xf32>
      %196 = arith.subf %arg15, %195 : vector<8x1xf32>
      %197 = math.exp %196 : vector<8x1xf32>
      %198 = vector.broadcast %195 : vector<8x1xf32> to vector<8x8xf32>
      %199 = arith.subf %192, %198 : vector<8x8xf32>
      %200 = math.exp %199 : vector<8x8xf32>
      %201 = arith.mulf %197, %arg16 : vector<8x1xf32>
      %cst_82 = arith.constant dense<0.000000e+00> : vector<8xf32>
      %202 = vector.multi_reduction <add>, %200, %cst_82 [1] : vector<8x8xf32> to vector<8xf32>
      %203 = vector.shape_cast %202 : vector<8xf32> to vector<8x1xf32>
      %204 = arith.addf %201, %203 : vector<8x1xf32>
      %205 = vector.broadcast %197 : vector<8x1xf32> to vector<8x8xf32>
      %206 = arith.mulf %205, %arg17 : vector<8x8xf32>
      %cst_83 = arith.constant dense<0.000000e+00> : vector<8x8xf32>
      %207 = tpu.matmul %200, %190, %cst_83 {dimension_numbers = #tpu.dot_dimension_numbers<[1], [0], [0], [1], [0, 0, 1, 1], [], []>} : vector<8x8xf32>, vector<8x8xf32>, vector<8x8xf32> -> vector<8x8xf32>
      %208 = arith.addf %206, %207 : vector<8x8xf32>
      scf.yield %195, %204, %208 : vector<8x1xf32>, vector<8x1xf32>, vector<8x8xf32>
    }
    %c8_i32_46 = arith.constant 8 : i32
    %112 = arith.muli %arg1, %c8_i32_46 : i32
    %113 = tpu.assume_multiple %112, 8 : i32
    %114 = arith.index_cast %113 : i32 to index
    %c16 = arith.constant 16 : index
    %115 = vector.load %arg11[%114, %c16] : memref<8x32xf32, #tpu.memory_space<vmem>>, vector<8x8xf32>
    %116 = arith.index_cast %113 : i32 to index
    %c16_47 = arith.constant 16 : index
    %117 = vector.load %arg12[%116, %c16_47] : memref<8x32xf32, #tpu.memory_space<vmem>>, vector<8x8xf32>
    %118 = vector.extract_strided_slice %30 {offsets = [0, 16], sizes = [8, 8], strides = [1, 1]} : vector<8x32xf32> to vector<8x8xf32>
    %cst_48 = arith.constant dense<0.000000e+00> : vector<8x8xf32>
    %119 = tpu.matmul %118, %115, %cst_48 {dimension_numbers = #tpu.dot_dimension_numbers<[1], [1], [0], [0], [0, 0, 1, 0], [], []>} : vector<8x8xf32>, vector<8x8xf32>, vector<8x8xf32> -> vector<8x8xf32>
    %cst_49 = arith.constant -1.000000e+30 : f32
    %120 = vector.broadcast %cst_49 : f32 to vector<8x8xf32>
    %121 = arith.select %33, %119, %120 : vector<8x8xi1>, vector<8x8xf32>
    %cst_50 = arith.constant dense<0xFF800000> : vector<8xf32>
    %122 = vector.multi_reduction <maximumf>, %121, %cst_50 [1] : vector<8x8xf32> to vector<8xf32>
    %123 = vector.shape_cast %122 : vector<8xf32> to vector<8x1xf32>
    %124 = arith.maximumf %111#0, %123 : vector<8x1xf32>
    %125 = arith.subf %111#0, %124 : vector<8x1xf32>
    %126 = math.exp %125 : vector<8x1xf32>
    %127 = vector.broadcast %124 : vector<8x1xf32> to vector<8x8xf32>
    %128 = arith.subf %121, %127 : vector<8x8xf32>
    %129 = math.exp %128 : vector<8x8xf32>
    %130 = arith.mulf %126, %111#1 : vector<8x1xf32>
    %cst_51 = arith.constant dense<0.000000e+00> : vector<8xf32>
    %131 = vector.multi_reduction <add>, %129, %cst_51 [1] : vector<8x8xf32> to vector<8xf32>
    %132 = vector.shape_cast %131 : vector<8xf32> to vector<8x1xf32>
    %133 = arith.addf %130, %132 : vector<8x1xf32>
    %134 = vector.broadcast %126 : vector<8x1xf32> to vector<8x8xf32>
    %135 = arith.mulf %134, %111#2 : vector<8x8xf32>
    %cst_52 = arith.constant dense<0.000000e+00> : vector<8x8xf32>
    %136 = tpu.matmul %129, %117, %cst_52 {dimension_numbers = #tpu.dot_dimension_numbers<[1], [0], [0], [1], [0, 0, 1, 1], [], []>} : vector<8x8xf32>, vector<8x8xf32>, vector<8x8xf32> -> vector<8x8xf32>
    %137 = arith.addf %135, %136 : vector<8x8xf32>
    %138 = tpu.reciprocal %133 {approx = true} : vector<8x1xf32> -> vector<8x1xf32>
    %139 = vector.broadcast %138 : vector<8x1xf32> to vector<8x8xf32>
    %140 = arith.mulf %137, %139 : vector<8x8xf32>
    %c0_53 = arith.constant 0 : index
    %c16_54 = arith.constant 16 : index
    %141 = vector.load %arg13[%c0_53, %c16_54] : memref<8x32xf32, #tpu.memory_space<vmem>>, vector<8x8xf32>
    tpu.vector_store %arg13[%c0_53, %c16_54], %140 {strides = array<i32>} : memref<8x32xf32, #tpu.memory_space<vmem>>, vector<8x8xf32>,
    %cst_55 = arith.constant -1.000000e+30 : f32
    %142 = vector.broadcast %cst_55 : f32 to vector<8x1xf32>
    %cst_56 = arith.constant 0.000000e+00 : f32
    %143 = vector.broadcast %cst_56 : f32 to vector<8x1xf32>
    %cst_57 = arith.constant 0.000000e+00 : f32
    %144 = vector.broadcast %cst_57 : f32 to vector<8x8xf32>
    %c0_i32_58 = arith.constant 0 : i32
    %145 = arith.subi %arg1, %c0_i32_58 : i32
    %146 = arith.addi %c0_i32_58, %145 : i32
    %c1_i32_59 = arith.constant 1 : i32
    %147:3 = scf.for %arg14 = %c0_i32_58 to %146 step %c1_i32_59 iter_args(%arg15 = %142, %arg16 = %143, %arg17 = %144) -> (vector<8x1xf32>, vector<8x1xf32>, vector<8x8xf32>)  : i32 {
      %c8_i32_77 = arith.constant 8 : i32
      %185 = arith.muli %arg14, %c8_i32_77 : i32
      %186 = tpu.assume_multiple %185, 8 : i32
      %187 = arith.index_cast %186 : i32 to index
      %c24_78 = arith.constant 24 : index
      %188 = vector.load %arg11[%187, %c24_78] : memref<8x32xf32, #tpu.memory_space<vmem>>, vector<8x8xf32>
      %189 = arith.index_cast %186 : i32 to index
      %c24_79 = arith.constant 24 : index
      %190 = vector.load %arg12[%189, %c24_79] : memref<8x32xf32, #tpu.memory_space<vmem>>, vector<8x8xf32>
      %191 = vector.extract_strided_slice %30 {offsets = [0, 24], sizes = [8, 8], strides = [1, 1]} : vector<8x32xf32> to vector<8x8xf32>
      %cst_80 = arith.constant dense<0.000000e+00> : vector<8x8xf32>
      %192 = tpu.matmul %191, %188, %cst_80 {dimension_numbers = #tpu.dot_dimension_numbers<[1], [1], [0], [0], [0, 0, 1, 0], [], []>} : vector<8x8xf32>, vector<8x8xf32>, vector<8x8xf32> -> vector<8x8xf32>
      %cst_81 = arith.constant dense<0xFF800000> : vector<8xf32>
      %193 = vector.multi_reduction <maximumf>, %192, %cst_81 [1] : vector<8x8xf32> to vector<8xf32>
      %194 = vector.shape_cast %193 : vector<8xf32> to vector<8x1xf32>
      %195 = arith.maximumf %arg15, %194 : vector<8x1xf32>
      %196 = arith.subf %arg15, %195 : vector<8x1xf32>
      %197 = math.exp %196 : vector<8x1xf32>
      %198 = vector.broadcast %195 : vector<8x1xf32> to vector<8x8xf32>
      %199 = arith.subf %192, %198 : vector<8x8xf32>
      %200 = math.exp %199 : vector<8x8xf32>
      %201 = arith.mulf %197, %arg16 : vector<8x1xf32>
      %cst_82 = arith.constant dense<0.000000e+00> : vector<8xf32>
      %202 = vector.multi_reduction <add>, %200, %cst_82 [1] : vector<8x8xf32> to vector<8xf32>
      %203 = vector.shape_cast %202 : vector<8xf32> to vector<8x1xf32>
      %204 = arith.addf %201, %203 : vector<8x1xf32>
      %205 = vector.broadcast %197 : vector<8x1xf32> to vector<8x8xf32>
      %206 = arith.mulf %205, %arg17 : vector<8x8xf32>
      %cst_83 = arith.constant dense<0.000000e+00> : vector<8x8xf32>
      %207 = tpu.matmul %200, %190, %cst_83 {dimension_numbers = #tpu.dot_dimension_numbers<[1], [0], [0], [1], [0, 0, 1, 1], [], []>} : vector<8x8xf32>, vector<8x8xf32>, vector<8x8xf32> -> vector<8x8xf32>
      %208 = arith.addf %206, %207 : vector<8x8xf32>
      scf.yield %195, %204, %208 : vector<8x1xf32>, vector<8x1xf32>, vector<8x8xf32>
    }
    %c8_i32_60 = arith.constant 8 : i32
    %148 = arith.muli %arg1, %c8_i32_60 : i32
    %149 = tpu.assume_multiple %148, 8 : i32
    %150 = arith.index_cast %149 : i32 to index
    %c24 = arith.constant 24 : index
    %151 = vector.load %arg11[%150, %c24] : memref<8x32xf32, #tpu.memory_space<vmem>>, vector<8x8xf32>
    %152 = arith.index_cast %149 : i32 to index
    %c24_61 = arith.constant 24 : index
    %153 = vector.load %arg12[%152, %c24_61] : memref<8x32xf32, #tpu.memory_space<vmem>>, vector<8x8xf32>
    %154 = vector.extract_strided_slice %30 {offsets = [0, 24], sizes = [8, 8], strides = [1, 1]} : vector<8x32xf32> to vector<8x8xf32>
    %cst_62 = arith.constant dense<0.000000e+00> : vector<8x8xf32>
    %155 = tpu.matmul %154, %151, %cst_62 {dimension_numbers = #tpu.dot_dimension_numbers<[1], [1], [0], [0], [0, 0, 1, 0], [], []>} : vector<8x8xf32>, vector<8x8xf32>, vector<8x8xf32> -> vector<8x8xf32>
    %cst_63 = arith.constant -1.000000e+30 : f32
    %156 = vector.broadcast %cst_63 : f32 to vector<8x8xf32>
    %157 = arith.select %33, %155, %156 : vector<8x8xi1>, vector<8x8xf32>
    %cst_64 = arith.constant dense<0xFF800000> : vector<8xf32>
    %158 = vector.multi_reduction <maximumf>, %157, %cst_64 [1] : vector<8x8xf32> to vector<8xf32>
    %159 = vector.shape_cast %158 : vector<8xf32> to vector<8x1xf32>
    %160 = arith.maximumf %147#0, %159 : vector<8x1xf32>
    %161 = arith.subf %147#0, %160 : vector<8x1xf32>
    %162 = math.exp %161 : vector<8x1xf32>
    %163 = vector.broadcast %160 : vector<8x1xf32> to vector<8x8xf32>
    %164 = arith.subf %157, %163 : vector<8x8xf32>
    %165 = math.exp %164 : vector<8x8xf32>
    %166 = arith.mulf %162, %147#1 : vector<8x1xf32>
    %cst_65 = arith.constant dense<0.000000e+00> : vector<8xf32>
    %167 = vector.multi_reduction <add>, %165, %cst_65 [1] : vector<8x8xf32> to vector<8xf32>
    %168 = vector.shape_cast %167 : vector<8xf32> to vector<8x1xf32>
    %169 = arith.addf %166, %168 : vector<8x1xf32>
    %170 = vector.broadcast %162 : vector<8x1xf32> to vector<8x8xf32>
    %171 = arith.mulf %170, %147#2 : vector<8x8xf32>
    %cst_66 = arith.constant dense<0.000000e+00> : vector<8x8xf32>
    %172 = tpu.matmul %165, %153, %cst_66 {dimension_numbers = #tpu.dot_dimension_numbers<[1], [0], [0], [1], [0, 0, 1, 1], [], []>} : vector<8x8xf32>, vector<8x8xf32>, vector<8x8xf32> -> vector<8x8xf32>
    %173 = arith.addf %171, %172 : vector<8x8xf32>
    %174 = tpu.reciprocal %169 {approx = true} : vector<8x1xf32> -> vector<8x1xf32>
    %175 = vector.broadcast %174 : vector<8x1xf32> to vector<8x8xf32>
    %176 = arith.mulf %173, %175 : vector<8x8xf32>
    %c0_67 = arith.constant 0 : index
    %c24_68 = arith.constant 24 : index
    %177 = vector.load %arg13[%c0_67, %c24_68] : memref<8x32xf32, #tpu.memory_space<vmem>>, vector<8x8xf32>
    tpu.vector_store %arg13[%c0_67, %c24_68], %176 {strides = array<i32>} : memref<8x32xf32, #tpu.memory_space<vmem>>, vector<8x8xf32>,
    %c0_69 = arith.constant 0 : index
    %c0_70 = arith.constant 0 : index
    %178 = vector.load %arg13[%c0_69, %c0_70] : memref<8x32xf32, #tpu.memory_space<vmem>>, vector<8x32xf32>
    %c0_71 = arith.constant 0 : index
    %c0_72 = arith.constant 0 : index
    %179 = vector.load %arg9[%c0_71, %c0_72] : memref<32x32xf32, #tpu.memory_space<vmem>>, vector<32x32xf32>
    %cst_73 = arith.constant dense<0.000000e+00> : vector<8x32xf32>
    %180 = tpu.matmul %178, %179, %cst_73 {dimension_numbers = #tpu.dot_dimension_numbers<[1], [0], [0], [1], [0, 0, 1, 1], [], []>} : vector<8x32xf32>, vector<32x32xf32>, vector<8x32xf32> -> vector<8x32xf32>
    %181 = arith.addf %180, %4 : vector<8x32xf32>
    %c0_74 = arith.constant 0 : index
    %c0_75 = arith.constant 0 : index
    %c0_76 = arith.constant 0 : index
    %182 = vector.load %arg10[%c0_74, %c0_75, %c0_76] : memref<1x8x32xf32, #tpu.memory_space<vmem>>, vector<1x8x32xf32>
    %183 = vector.shape_cast %182 : vector<1x8x32xf32> to vector<8x32xf32>
    %184 = vector.shape_cast %181 : vector<8x32xf32> to vector<1x8x32xf32>
    tpu.vector_store %arg10[%c0_74, %c0_75, %c0_76], %184 {strides = array<i32>} : memref<1x8x32xf32, #tpu.memory_space<vmem>>, vector<1x8x32xf32>,
    return
  }
  func.func @transform_0(%arg0: i32, %arg1: i32) -> (i32, i32, i32) {
    %c0_i32 = arith.constant 0 : i32
    %c0_i32_0 = arith.constant 0 : i32
    return %arg0, %arg1, %c0_i32 : i32, i32, i32
  }
  func.func @transform_1(%arg0: i32, %arg1: i32) -> (i32, i32, i32) {
    %c0_i32 = arith.constant 0 : i32
    %c0_i32_0 = arith.constant 0 : i32
    %c0_i32_1 = arith.constant 0 : i32
    return %arg0, %c0_i32, %c0_i32_0 : i32, i32, i32
  }
  func.func @transform_2(%arg0: i32, %arg1: i32) -> (i32, i32) {
    %c0_i32 = arith.constant 0 : i32
    %c0_i32_0 = arith.constant 0 : i32
    %c0_i32_1 = arith.constant 0 : i32
    return %c0_i32, %c0_i32_0 : i32, i32
  }
  func.func @transform_3(%arg0: i32, %arg1: i32) -> (i32, i32) {
    %c0_i32 = arith.constant 0 : i32
    %c0_i32_0 = arith.constant 0 : i32
    %c0_i32_1 = arith.constant 0 : i32
    return %c0_i32, %c0_i32_0 : i32, i32
  }
  func.func @transform_4(%arg0: i32, %arg1: i32) -> (i32, i32) {
    %c0_i32 = arith.constant 0 : i32
    %c0_i32_0 = arith.constant 0 : i32
    %c0_i32_1 = arith.constant 0 : i32
    return %c0_i32, %c0_i32_0 : i32, i32
  }
  func.func @transform_5(%arg0: i32, %arg1: i32) -> (i32, i32) {
    %c0_i32 = arith.constant 0 : i32
    %c0_i32_0 = arith.constant 0 : i32
    %c0_i32_1 = arith.constant 0 : i32
    return %c0_i32, %c0_i32_0 : i32, i32
  }
  func.func @transform_6(%arg0: i32, %arg1: i32) -> (i32, i32) {
    %c0_i32 = arith.constant 0 : i32
    %c0_i32_0 = arith.constant 0 : i32
    %c0_i32_1 = arith.constant 0 : i32
    return %c0_i32, %c0_i32_0 : i32, i32
  }
  func.func @transform_7(%arg0: i32, %arg1: i32) -> (i32, i32) {
    %c0_i32 = arith.constant 0 : i32
    %c0_i32_0 = arith.constant 0 : i32
    %c0_i32_1 = arith.constant 0 : i32
    return %c0_i32, %c0_i32_0 : i32, i32
  }
  func.func @transform_8(%arg0: i32, %arg1: i32) -> (i32, i32, i32) {
    %c0_i32 = arith.constant 0 : i32
    %c0_i32_0 = arith.constant 0 : i32
    return %arg0, %arg1, %c0_i32 : i32, i32, i32
  }
}

</mosaic_0001>

<bundles_post_ra>
// kernel: tpu_custom_call.1
= control target key start
LH: loop header
LB: loop body
LE: loop exit
PB: predicated region body
PF: predicated region fallthrough
CT: control target
= control target key end

     0   :  { %s3519_s0 = inlined_call_operand.hbm [shape: f32[2,8,32], index: 0, kind: input, shape index: {}]   ;;  %s3520_s1 = inlined_call_operand.hbm [shape: f32[2,8,32], index: 1, kind: input, shape index: {}]   ;;  %s3521_s2 = inlined_call_operand.vmem [shape: f32[1,32], index: 2, kind: input, shape index: {}]   ;;  %s3522_s3 = inlined_call_operand.vmem [shape: f32[1,32], index: 3, kind: input, shape index: {}]   ;;  %s3523_s4 = inlined_call_operand.hbm [shape: f32[32,32], index: 4, kind: input, shape index: {}]   ;;  %s3524_s5 = inlined_call_operand.hbm [shape: f32[32,32], index: 5, kind: input, shape index: {}]   ;;  %s3525_s6 = inlined_call_operand.hbm [shape: f32[32,32], index: 6, kind: input, shape index: {}]   ;;  %s3526_s7 = inlined_call_operand.hbm [shape: f32[32,32], index: 7, kind: input, shape index: {}]   ;;  %s3527_s8 = inlined_call_operand.hbm [shape: f32[2,8,32], index: 8, kind: output, shape index: {}]  }
   0x1   :  { %3530 = sst [smem:[#allocation24_spill]] %s3519_s0 }
   0x2   :  { %3531 = sst [smem:[#allocation25_spill]] %s3523_s4 }
   0x3   :  { %3532 = sst [smem:[#allocation26_spill]] %s3524_s5 }
   0x4   :  { %3533 = sst [smem:[#allocation27_spill]] %s3525_s6 }
   0x5   :  { %3534 = sst [smem:[#allocation28_spill]] %s3526_s7 }
   0x6   :  { %13 = vsyncpa [#allocation6], 0 }
   0x7   :  { %15 = vsyncpa [#allocation6 + $0x1], 0 }
   0x8   :  { %16 = vsyncpa [#allocation9], 0 }
   0x9   :  { %18 = vsyncpa [#allocation9 + $0x1], 0 }
   0xa   :  { %19 = vsyncpa [#allocation12], 0 }
   0xb   :  { %20 = vsyncpa [#allocation15], 0 }
   0xc   :  { %21 = vsyncpa [#allocation7], 0 }
   0xd   :  { %23 = vsyncpa [#allocation7 + $0x1], 0  ;;  %s3163_s27 = smov 0   ;;  %s3165_s28 = smov 0  }
   0xe   :  { %s3167_s29 = smov 0   ;;  %s3169_s30 = smov 0  }
   0xf   :  { %s3171_s9 = smov 0   ;;  %s3173_s10 = smov 0  }
  0x10 LB: > { %s3194_s11 = sadd.s32 4294967295, %s3099_s10   ;;  %p2519_p0 = scmp.ge.s32.totalorder %s3099_s10, 1  ;;  %s3099_s10 = sphi %s3173_s10, %s29_s10   ;;  %s3095_s9 = sphi %s3171_s9, %s3560_s9   ;;  %s3091_s30 = sphi %s3169_s30, %s3559_s30   ;;  %s3087_s29 = sphi %s3167_s29, %s3558_s29   ;;  %s3083_s28 = sphi %s3165_s28, %s3557_s28   ;;  %s3079_s27 = sphi %s3163_s27, %s3556_s27  }
  0x11   : > { %p3529_p1 = scmp.eq.s32.totalorder %s3194_s11, 0  ;;  %p254_p2 = scmp.lt.s32.totalorder %s3099_s10, 3 }
  0x12   : > { %s3101_s13 = smov [#allocation10]   ;;  %s3102_s16 = smov [#allocation11]  }
  0x13   : > { %p3199_p3 = pnand %p2519_p0, %p254_p2  ;;  %s272_s14 = sshll.u32 %s3101_s13, 4  ;;  %s273_s14 = int_to_ptr.vmem [resolvable:$true] %s272_s14 }
  0x14   : > { %s285_s17 = sshll.u32 %s3102_s16, 4  ;;  %s3103_s18 = smov [#allocation13]   ;;  %s286_s17 = int_to_ptr.vmem [resolvable:$true] %s285_s17 }
  0x15   : > { %p2719_p4 = pneg %p3199_p3  ;;  %s298_s19 = sshll.u32 %s3103_s18, 4  ;;  %s299_s19 = int_to_ptr.vmem [resolvable:$true] %s298_s19 }
  0x16   : > { %s2854_s20 = scalar_lea.vmem %s273_s14, 512  ;;  %p2862_p11 = scmp.lt.s32.totalorder %s273_s14, %s273_s14 }
  0x17   : > { %p3208_p6 = pnand %p2719_p4, %p3529_p1  ;;  %p2855_p8 = scmp.ne.s32.totalorder %s273_s14, %s2854_s20 }
  0x18   : > { %p2863_p12 = scmp.lt.s32.totalorder %s2854_s20, %s2854_s20 }
  0x19   : > { %p2845_p7 = pneg %p3208_p6 }
  0x1a   : > { %p2864_p13 = por %p2863_p12, %p2862_p11 }
  0x1b   : > { %p2857_p9 = pnand %p2855_p8, %p2845_p7 }
  0x1d   : > { %p2858_p10 = pneg %p2857_p9 }
  0x1f   : > { %p2865_p0 = pnand %p2864_p13, %p2858_p10 }
  0x21   : > { %2868 = shalt.err (!%p2865_p0)
}
  0x22   : > { %s3104_s21 = smov 128   ;;  %s3105_s22 = smov 8  }
  0x23   : > { %s3537_s4 = sld [smem:[#allocation25_spill]]  ;;  %s2880_s25 = scalar_lea.vmem %s286_s17, 512 }
  0x24   : > { %p2881_p2 = scmp.ne.s32.totalorder %s286_s17, %s2880_s25  ;;  %p2888_p9 = scmp.lt.s32.totalorder %s286_s17, %s286_s17 }
  0x25   : > { %p2889_p10 = scmp.lt.s32.totalorder %s2880_s25, %s2880_s25 }
  0x26   : > { %p2883_p4 = pnand %p2881_p2, %p2845_p7 }
  0x27   : > { %p2890_p11 = por %p2889_p10, %p2888_p9 }
  0x28   : > { %p2884_p8 = pneg %p2883_p4 }
  0x29   : > { %2722 = dma.hbm_to_vmem [thread:$0]  (!%p3208_p6), %s3537_s4, 512, %s273_s14, [#allocation9], %s3104_s21, %s3104_s21, %s3105_s22  }
  0x2a   : > { %p2891_p12 = pnand %p2890_p11, %p2884_p8 }
  0x2c   : > { %2894 = shalt.err (!%p2891_p12)
}
  0x2d   : > { %s3538_s5 = sld [smem:[#allocation26_spill]]  ;;  %s2906_s14 = scalar_lea.vmem %s299_s19, 512 }
  0x2e   : > { %p2907_p13 = scmp.ne.s32.totalorder %s299_s19, %s2906_s14  ;;  %p2914_p4 = scmp.lt.s32.totalorder %s299_s19, %s299_s19 }
  0x2f   : > { %p2915_p8 = scmp.lt.s32.totalorder %s2906_s14, %s2906_s14 }
  0x30   : > { %p2909_p0 = pnand %p2907_p13, %p2845_p7 }
  0x31   : > { %p2916_p9 = por %p2915_p8, %p2914_p4 }
  0x32   : > { %p2910_p2 = pneg %p2909_p0 }
  0x33   : > { %2725 = dma.hbm_to_vmem [thread:$0]  (!%p3208_p6), %s3538_s5, 512, %s286_s17, [#allocation12], %s3104_s21, %s3104_s21, %s3105_s22  }
  0x34   : > { %p2917_p10 = pnand %p2916_p9, %p2910_p2 }
  0x36   : > { %2920 = shalt.err (!%p2917_p10)
}
  0x37   : > { %s3539_s6 = sld [smem:[#allocation27_spill]]  ;;  %s3106_s17 = smov [#allocation14]  }
  0x38   : > { %s311_s20 = sshll.u32 %s3106_s17, 4  ;;  %s312_s20 = int_to_ptr.vmem [resolvable:$true] %s311_s20 }
  0x39   : > { %s2932_s23 = scalar_lea.vmem %s312_s20, 512  ;;  %p2940_p0 = scmp.lt.s32.totalorder %s312_s20, %s312_s20 }
  0x3a   : > { %p2933_p11 = scmp.ne.s32.totalorder %s312_s20, %s2932_s23  ;;  %p2941_p2 = scmp.lt.s32.totalorder %s2932_s23, %s2932_s23 }
  0x3c   : > { %p2935_p12 = pnand %p2933_p11, %p2845_p7  ;;  %p2942_p4 = por %p2941_p2, %p2940_p0 }
  0x3d   : > { %2728 = dma.hbm_to_vmem [thread:$0]  (!%p3208_p6), %s3539_s6, 512, %s299_s19, [#allocation12], %s3104_s21, %s3104_s21, %s3105_s22  }
  0x3e   : > { %p2936_p13 = pneg %p2935_p12 }
  0x40   : > { %p2943_p8 = pnand %p2942_p4, %p2936_p13 }
  0x42   : > { %2946 = shalt.err (!%p2943_p8)
}
  0x43   : > { %s3540_s7 = sld [smem:[#allocation28_spill]]  ;;  %s2518_s15 = sadd.s32 4294967294, %s3099_s10  }
  0x44   : > { %s41_s25 = sadd.s32 1, %s3095_s9  ;;  %s50_s26 = sadd.s32 1, %s3087_s29 }
  0x45   : > { %p43_p7 = scmp.ge.s32.totalorder %s41_s25, 2  ;;  %p57_p9 = scmp.ne.s32.totalorder %s3087_s29, %s3083_s28 }
  0x46   : > { %p58_p10 = scmp.eq.s32.totalorder %s3099_s10, 0  ;;  %p63_p12 = scmp.ne.s32.totalorder %s3083_s28, %s3079_s27 }
  0x47   : > { %s3562_s25 = smov (%p43_p7, %s41_s25), 0  ;;  %p247_p4 = scmp.eq.s32.totalorder %s2518_s15, 1 }
  0x48   : > { %3541 = sst [smem:[#allocation23_spill]] %s3562_s25  ;;  %p3266_p11 = por %p58_p10, %p57_p9 }
  0x49   : > { %2731 = dma.hbm_to_vmem [thread:$0]  (!%p3208_p6), %s3540_s7, 512, %s312_s20, [#allocation15], %s3104_s21, %s3104_s21, %s3105_s22  }
  0x4a   : > { %s45_s21 = ssub.s32 %s3095_s9, %s3562_s25  ;;  %p241_p6 = scmp.eq.s32.totalorder %s3194_s11, 1 }
  0x4b   : > { %p48_p13 = scmp.eq.s32.totalorder %s45_s21, 0  ;;  %p3277_p0 = por %p3529_p1, %p63_p12 }
  0x4c   : > { %p3281_p2 = por %p241_p6, %p57_p9  ;;  %p3288_p8 = por %p247_p4, %p63_p12 }
  0x4d   : > { %s3286_s16 = scalar_select %p48_p13, %s3087_s29, %s50_s26  }
  0x4e   : > { %p2747_p7 = scmp.lt.s32.totalorder %s3099_s10, 2  ;;  %s325_s17 = sand.u32 1, %s3087_s29  }
  0x4f   : > { %s2526_s20 = sshll.u32 %s3095_s9, 7  ;;  %s2525_s23 = sshll.u32 %s325_s17, 3 }
  0x50   : > { %s3546_s0 = sld [smem:[#allocation24_spill]]  ;;  %s329_s4 = scalar_lea.vmem [#allocation5], %s2525_s23 }
  0x51   : > { %s337_s5 = sshll.u32 %s329_s4, 4  ;;  %p3300_p9 = pnand %p2747_p7, %p3266_p11  ;;  %s338_s5 = int_to_ptr.vmem [resolvable:$true] %s337_s5 }
  0x52   : > { %s3307_s7 = scalar_lea.hbm %s3520_s1, %s2526_s20  ;;  %s326_s25 = scalar_lea.sflag [#allocation6], %s325_s17 }
  0x53   : > { %p2949_p10 = pneg %p3300_p9  ;;  %s2960_s19 = scalar_lea.vmem %s338_s5, 128 }
  0x54   : > { %p2961_p12 = scmp.ne.s32.totalorder %s338_s5, %s2960_s19  ;;  %s3107_s4 = smov [#allocation5]  }
  0x55   : > { %s2965_s13 = sshll.u32 %s3107_s4, 4  ;;  %s2966_s13 = int_to_ptr.vmem [resolvable:$false] %s2965_s13 }
  0x56   : > { %s335_s21 = scalar_lea.hbm %s3546_s0, %s2526_s20  ;;  %p2963_p6 = pnand %p2961_p12, %p2949_p10 }
  0x57   : > { %s2967_s24 = scalar_lea.vmem %s2966_s13, 256  ;;  %p2968_p13 = scmp.lt.s32.totalorder %s338_s5, %s2966_s13 }
  0x58   : > { %p2964_p11 = pneg %p2963_p6  ;;  %p2969_p4 = scmp.lt.s32.totalorder %s2967_s24, %s2960_s19 }
  0x5a   : > { %p2970_p7 = por %p2969_p4, %p2968_p13 }
  0x5c   : > { %p2971_p5 = pnand %p2970_p7, %p2964_p11 }
  0x5e   : > { %2974 = shalt.err (!%p2971_p5)
}
  0x5f   : > { %2735 = dma.hbm_to_vmem [thread:$0]  (!%p3300_p9), %s335_s21, 128, %s338_s5, %s326_s25  }
  0x60   : > { %s344_s17 = sand.u32 1, %s3099_s10   ;;  %s348_s20 = scalar_lea.vmem [#allocation8], %s2525_s23 }
  0x61   : > { %s355_s15 = sshll.u32 %s348_s20, 4  ;;  %s345_s26 = scalar_lea.sflag [#allocation9], %s344_s17  ;;  %s356_s15 = int_to_ptr.vmem [resolvable:$true] %s355_s15 }
  0x62   : > { %s2988_s0 = scalar_lea.vmem %s356_s15, 128  ;;  %s3108_s19 = smov [#allocation8]  }
  0x63   : > { %p2989_p12 = scmp.ne.s32.totalorder %s356_s15, %s2988_s0  ;;  %s2993_s4 = sshll.u32 %s3108_s19, 4  ;;  %s2994_s4 = int_to_ptr.vmem [resolvable:$false] %s2993_s4 }
  0x64   : > { %s2995_s13 = scalar_lea.vmem %s2994_s4, 256  ;;  %p2996_p5 = scmp.lt.s32.totalorder %s356_s15, %s2994_s4 }
  0x65   : > { %p2991_p6 = pnand %p2989_p12, %p2949_p10  ;;  %p2997_p11 = scmp.lt.s32.totalorder %s2995_s13, %s2988_s0 }
  0x67   : > { %p2992_p1 = pneg %p2991_p6  ;;  %p2998_p13 = por %p2997_p11, %p2996_p5 }
  0x69   : > { %p2999_p4 = pnand %p2998_p13, %p2992_p1 }
  0x6b   : > { %3002 = shalt.err (!%p2999_p4)
}
  0x6c   : > { %2738 = dma.hbm_to_vmem [thread:$0]  (!%p3300_p9), %s3307_s7, 128, %s356_s15, %s345_s26  }
  0x6d   : > { %364 = sbr.rel (%p3199_p3) target bundleno = 1884 (0x75c), region = 52  ;;  %s3326_s5 = sand.u32 (!%p3199_p3), 1, %s3083_s28  }
  0x6e   : > { %s3329_s25 = sshll.u32 (!%p3199_p3), %s3326_s5, 3  ;;  %s367_s0 = scalar_lea.sflag (!%p3199_p3), [#allocation6], %s3326_s5 }
  0x6f   : > { %s370_s23 = scalar_lea.vmem (!%p3199_p3), [#allocation5], %s3329_s25 }
  0x72   : > { %3054 = dma.done.wait (%p3277_p0), %s367_s0, 128  }
  0x73   : > { %3056 = vsyncadd (%p3277_p0), %s367_s0, 4294967168  ;;  %s375_s6 = sand.u32 1, %s3194_s11   ;;  %s379_s12 = scalar_lea.vmem [#allocation8], %s3329_s25 }
  0x74   : > { %s376_s7 = scalar_lea.sflag [#allocation9], %s375_s6 }
  0x75   : > { %3058 = dma.done.wait (%p3277_p0), %s376_s7, 128  }
  0x76   : > { %3060 = vsyncadd (%p3277_p0), %s376_s7, 4294967168  ;;  %p3548_p1 = scmp.eq.s32.totalorder %s3194_s11, 0 }
  0x78   : > { %3062 = dma.done.wait (%p3548_p1), [#allocation9], 512   ;;  %p3549_p3 = pmov %p3548_p1 }
  0x79   : > { %p3550_p9 = pmov %p3548_p1 }
  0x7a   : > { %3064 = vsyncadd (%p3549_p3), [#allocation9], 4294966784 }
  0x7b   : > { %3066 = dma.done.wait (%p3550_p9), [#allocation12], 1024   ;;  %p3551_p10 = pmov %p3548_p1 }
  0x7c   : > { %p3552_p7 = pmov %p3548_p1 }
  0x7d   : > { %3068 = vsyncadd (%p3551_p10), [#allocation12], 4294966272 }
  0x7e   : > { %3070 = dma.done.wait (%p3552_p7), [#allocation15], 512   ;;  %p3553_p12 = pmov %p3548_p1 }
  0x7f   : > { %vm438_vm0 = vcmask 261120   ;;  %v437_v0 = vld [vmem:[%s379_s12] sm:$0xff]  ;;  %v3355_v1 = vld [vmem:[%s370_s23] sm:$0xff]  ;;  %v3109_v16 = vmov 0.0   ;;  %vm3110_vm1 = vmmov 0   ;;  %vm922_vm2 = vcmask 64512  }
  0x80   : > { %3072 = vsyncadd (%p3553_p12), [#allocation15], 4294966784  ;;  %v439_v2 = vsel %vm438_vm0, %v437_v0, 0.0  ;;  %v624_v3 = vsel %vm438_vm0, %v3355_v1, 0.0  ;;  %v472_v14 = vld [vmem:[#allocation11 + $0x18] sm:$0xff]  ;;  %2613 = vmatprep.subr.mxu0 %v3109_v16  ;;  %2624 = vmatprep.subr.mxu1 %v3109_v16  ;;  %v471_v17 = vld [vmem:[#allocation11 + $0x10] sm:$0xff]  ;;  %v731_v55 = vlaneseq }
  0x81   : > { %440 = vadd.xlane.f32.xlu0 %v439_v2  ;;  %v550_v15 = vld [vmem:[#allocation13 + $0x18] sm:$0xff]  ;;  %v549_v18 = vld [vmem:[#allocation13 + $0x10] sm:$0xff]  ;;  %2614 = vmatpush3.msra.mxu0 %v472_v14  ;;  %v470_v19 = vld [vmem:[#allocation11 + $0x8] sm:$0xff]  ;;  %s3111_s17 = smov 120   ;;  %s3112_s20 = smov 112   ;;  %vm1462_vm4 = vcmask 130112  }
  0x82   : > { %2625 = vmatpush3.msra.mxu1 %v550_v15  ;;  %2615 = vmatprep.subr.mxu0 %v3109_v16  ;;  %v548_v20 = vld [vmem:[#allocation13 + $0x8] sm:$0xff]  ;;  %v469_v21 = vld [vmem:[#allocation11] sm:$0xff]  ;;  %v657_v35 = vld [vmem:[#allocation10 + $0x18] sm:$0xff]  ;;  %s3113_s15 = smov 104   ;;  %v732_v56 = vand.u32 127, %v731_v55  ;;  %v734_v57 = vshrl.u32 %v731_v55, 7 }
  0x83   : > { %2626 = vmatprep.subr.mxu1 %v3109_v16  ;;  %2616 = vmatpush3.msra.mxu0 %v471_v17  ;;  %v547_v22 = vld [vmem:[#allocation13] sm:$0xff]  ;;  %v2537_v29 = vld [vmem:[%s3521_s2] ss:$0 sm:$0xff]  ;;  %v656_v38 = vld [vmem:[#allocation10 + $0x10] sm:$0xff]  ;;  %s3114_s26 = smov 8   ;;  %s3115_s19 = smov 16  }
  0x84   : > { %2627 = vmatpush3.msra.mxu1 %v549_v18  ;;  %2617 = vmatprep.subr.mxu0 %v3109_v16  ;;  %v2538_v32 = vld [vmem:[%s3522_s3] ss:$0 sm:$0xff]  ;;  %v654_v41 = vld [vmem:[#allocation10] sm:$0xff]  ;;  %vm735_vm3 = vcmp.le.s32.totalorder %v732_v56, %v734_v57  ;;  %s3116_s4 = smov 24   ;;  %vm1833_vm5 = vcmask 195712   ;;  %vm2204_vm6 = vcmask 261312  }
  0x85   : > { %625 = vadd.xlane.f32.xlu0 %v624_v3  ;;  %2628 = vmatprep.subr.mxu1 %v3109_v16  ;;  %v655_v39 = vld [vmem:[#allocation10 + $0x8] sm:$0xff]  ;;  %s2574_s13 = sshll.u32 %s3091_s30, 7  ;;  %s432_s0 = scalar_lea.vmem [#allocation16], %s3329_s25 }
  0x86   : > { %2618 = vmatpush3.msra.mxu0 %v470_v19  ;;  %2629 = vmatpush3.msra.mxu1 %v548_v20  ;;  %s2300_s23 = sshll.u32 %s432_s0, 4  ;;  %s3476_s12 = scalar_lea.hbm %s3527_s8, %s2574_s13  ;;  %s2301_s23 = int_to_ptr.vmem [resolvable:$true] %s2300_s23 }
  0x87   : > { %2619 = vmatprep.subr.mxu0 %v3109_v16  ;;  %2630 = vmatprep.subr.mxu1 %v3109_v16  ;;  %s2286_s11 = scalar_lea.sflag [#allocation7], %s3326_s5  ;;  %s3003_s22 = scalar_lea.vmem %s2301_s23, 128 }
  0x88   : > { %2620 = vmatpush3.msra.mxu0 %v469_v21  ;;  %2621 = vmatprep.mubr.msk.f32.mxu0 %vm3110_vm1, %v3109_v16  ;;  %p3004_p0 = scmp.ne.s32.totalorder %s2301_s23, %s3003_s22  ;;  %s3117_s30 = smov [#allocation16]  }
  0x89   : > { %2631 = vmatpush3.msra.mxu1 %v547_v22  ;;  %2632 = vmatprep.mubr.msk.f32.mxu1 %vm3110_vm1, %v3109_v16  ;;  %s3007_s25 = sshll.u32 %s3117_s30, 4  ;;  %s3008_s25 = int_to_ptr.vmem [resolvable:$false] %s3007_s25 }
  0x8a   : > { %2635 = vmatprep.subr.mxu0 %v3109_v16  ;;  %2646 = vmatprep.subr.mxu1 %v3109_v16  ;;  %p3005_p6 = pnand %p3004_p0, %p3281_p2  ;;  %s3009_s21 = scalar_lea.vmem %s3008_s25, 256 }
  0x8b   : > { %p3010_p11 = scmp.lt.s32.totalorder %s2301_s23, %s3008_s25  ;;  %p3011_p13 = scmp.lt.s32.totalorder %s3009_s21, %s3003_s22 }
  0x8c   : > { %p3006_p5 = pneg %p3005_p6 }
  0x8d   : > { %p3012_p4 = por %p3011_p13, %p3010_p11 }
  0x8f   : > { %p3013_p1 = pnand %p3012_p4, %p3006_p5 }
 0x10a   : > { %v441_v4 = vpop.xlane.xlu0 %440 }
 0x10b   : > { %v443_v5 = vmul.f32 0.03125, %v441_v4 }
 0x10d   : > { %v444_v6 = vsub.f32 %v437_v0, %v443_v5 }
 0x10e   : > { %v626_v7 = vpop.xlane.xlu0 %625 }
 0x10f   : > { %v628_v8 = vmul.f32 0.03125, %v626_v7  ;;  %v445_v9 = vmul.f32 %v444_v6, %v444_v6  ;;  %v459_v30 = vmul.f32 %v2537_v29, %v444_v6 }
 0x111   : > { %v629_v10 = vsub.f32 %v3355_v1, %v628_v8  ;;  %v446_v11 = vsel %vm438_vm0, %v445_v9, 0.0 }
 0x112   : > { %447 = vadd.xlane.f32.xlu1 %v446_v11 }
 0x113   : > { %v630_v12 = vmul.f32 %v629_v10, %v629_v10  ;;  %v644_v37 = vmul.f32 %v2537_v29, %v629_v10 }
 0x115   : > { %v631_v13 = vsel %vm438_vm0, %v630_v12, 0.0 }
 0x116   : > { %632 = vadd.xlane.f32.xlu1 %v631_v13 }
 0x19b   : > { %v448_v23 = vpop.xlane.xlu1 %447 }
 0x19c   : > { %v449_v24 = vmul.f32 0.03125, %v448_v23 }
 0x19e   : > { %v450_v25 = vadd.f32 1e-05, %v449_v24 }
 0x19f   : > { %v633_v26 = vpop.xlane.xlu1 %632 }
 0x1a0   : > { %2815 = vrsqrt.f32 %v450_v25  ;;  %v634_v27 = vmul.f32 0.03125, %v633_v26 }
 0x1a2   : > { %v635_v28 = vadd.f32 1e-05, %v634_v27 }
 0x1a4   : > { %2817 = vrsqrt.f32 %v635_v28 }
 0x1ad   : > { %v2816_v31 = vpop.eup %2815 }
 0x1ae   : > { %v460_v33 = vmul.f32 %v2816_v31, %v459_v30 }
 0x1b0   : > { %v468_v34 = vadd.f32 %v2538_v32, %v460_v33 }
 0x1b1   : > { %v2818_v36 = vpop.eup %2817 }
 0x1b2   : > { %2622 = vmatmul.mubr.msk.f32.vlgmr.msra.gmra.mxu0 %vm438_vm0, %v468_v34  ;;  %2633 = vmatmul.mubr.msk.f32.vlgmr.msra.gmra.mxu1 %vm438_vm0, %v468_v34  ;;  %v645_v40 = vmul.f32 %v2818_v36, %v644_v37 }
 0x1b3   : > { %2636 = vmatpush3.msra.mxu0 %v657_v35  ;;  %2643 = vmatprep.mubr.msk.f32.mxu0 %vm3110_vm1, %v3109_v16 }
 0x1b4   : > { %2637 = vmatprep.subr.mxu0 %v3109_v16  ;;  %2648 = vmatprep.mubr.msk.f32.mxu1 %vm3110_vm1, %v3109_v16  ;;  %v653_v42 = vadd.f32 %v2538_v32, %v645_v40 }
 0x1b5   : > { %2638 = vmatpush3.msra.mxu0 %v656_v38 }
 0x1b6   : > { %2639 = vmatprep.subr.mxu0 %v3109_v16 }
 0x1b7   : > { %2640 = vmatpush3.msra.mxu0 %v655_v39 }
 0x1b8   : > { %2641 = vmatprep.subr.mxu0 %v3109_v16 }
 0x1b9   : > { %2642 = vmatpush3.msra.mxu0 %v654_v41 }
 0x1ba   : > { %2644 = vmatmul.mubr.msk.f32.vlgmr.msra.gmra.mxu0 %vm438_vm0, %v653_v42  ;;  %2666 = vmatprep.subr.mxu0 %v3109_v16 }
 0x1bb   : > { %2668 = vmatprep.mubr.msk.f32.mxu0 %vm3110_vm1, %v3109_v16 }
 0x272   : > { %v542_v43 = vpop.f32.mrf.mxu0  ;;  %v617_v44 = vpop.f32.mrf.mxu1 }
 0x273   : > { %546 = vst.msk [vmem:[#allocation2] sm:$0xff] %vm438_vm0, %v542_v43  ;;  %621 = vst.msk [vmem:[#allocation3] sm:$0xff] %vm438_vm0, %v617_v44 }
 0x274   : > { %v2623_v45 = vpop.f32.mrf.mxu0  ;;  %v2634_v46 = vpop.f32.mrf.mxu1 }
 0x27a   : > { %v727_v47 = vpop.f32.mrf.mxu0  ;;  %v919_v48 = vld [vmem:[#allocation2] sm:$0xff]  ;;  %v3402_v50 = vld [vmem:[#allocation3] sm:$0xff] }
 0x27b   : > { %2647 = vmatpush3.xpose.msk.msra.mxu1 %vm922_vm2, %v919_v48  ;;  %1285 = vrot.lane.b32.xlu1 %v919_v48, %s3111_s17 }
 0x27c   : > { %v2645_v49 = vpop.f32.mrf.mxu0  ;;  %2651 = vmatprep.subr.mxu1 %v3109_v16 }
 0x27e   : > { %2649 = vmatmul.mubr.msk.f32.vlgmr.msra.gmra.mxu1 %vm922_vm2, %v727_v47 }
 0x27f   : > { %1656 = vrot.lane.b32.xlu1 %v919_v48, %s3112_s20  ;;  %2652 = vmatpush3.msra.mxu1 %v3402_v50 }
 0x280   : > { %2653 = vmatprep.mubr.msk.f32.mxu1 %vm3110_vm1, %v3109_v16  ;;  %2656 = vmatprep.subr.mxu1 %v3109_v16 }
 0x283   : > { %1653 = vrot.lane.b32.xlu1 %v727_v47, %s3112_s20 }
 0x287   : > { %2027 = vrot.lane.b32.xlu1 %v919_v48, %s3113_s15 }
 0x2ed   : > { %v1286_v51 = vpop.permute.xlu1 %1285 }
 0x2f1   : > { %v1657_v52 = vpop.permute.xlu1 %1656 }
 0x2f2   : > { %2667 = vmatpush3.xpose.msk.msra.mxu0 %vm922_vm2, %v1657_v52 }
 0x2f3   : > { %2676 = vmatprep.subr.mxu0 %v3109_v16 }
 0x2f5   : > { %v1654_v53 = vpop.permute.xlu1 %1653 }
 0x2f6   : > { %2669 = vmatmul.mubr.msk.f32.vlgmr.msra.gmra.mxu0 %vm922_vm2, %v1654_v53 }
 0x2f7   : > { %2678 = vmatprep.mubr.msk.f32.mxu0 %vm3110_vm1, %v3109_v16 }
 0x2f9   : > { %v2028_v54 = vpop.permute.xlu1 %2027 }
 0x2fa   : > { %2677 = vmatpush3.xpose.msk.msra.mxu0 %vm922_vm2, %v2028_v54 }
 0x2fb   : > { %2686 = vmatprep.subr.mxu0 %v3109_v16 }
 0x33e   : > { %v995_v58 = vpop.f32.mrf.mxu1 }
 0x33f   : > { %v999_v59 = vsel %vm735_vm3, %v995_v58, -1e+30 }
 0x340   : > { %v2650_v60 = vpop.f32.mrf.mxu1  ;;  %v1000_v61 = vsel %vm922_vm2, %v999_v59, -inf }
 0x341   : > { %1001 = vmax.xlane.f32.xlu0 %v1000_v61 }
 0x357   : > { %1282 = vrot.lane.b32.xlu0 %v727_v47, %s3111_s17 }
 0x35b   : > { %2024 = vrot.lane.b32.xlu0 %v727_v47, %s3113_s15 }
 0x3b6   : > { %v1728_v62 = vpop.f32.mrf.mxu0 }
 0x3b7   : > { %v1732_v63 = vsel %vm735_vm3, %v1728_v62, -1e+30 }
 0x3b8   : > { %v2670_v0 = vpop.f32.mrf.mxu0  ;;  %v1733_v2 = vsel %vm922_vm2, %v1732_v63, -inf }
 0x3b9   : > { %1734 = vmax.xlane.f32.xlu0 %v1733_v2 }
 0x3ca   : > { %v1002_v3 = vpop.xlane.xlu0 %1001 }
 0x3cb   : > { %v1003_v4 = vmax.f32 %v1002_v3, -1e+30 }
 0x3cd   : > { %v1007_v5 = vsub.f32 %v999_v59, %v1003_v4  ;;  %v1004_v10 = vsub.f32 -1e+30, %v1003_v4 }
 0x3ce   : > { %v1283_v6 = vpop.permute.xlu0 %1282 }
 0x3cf   : > { %v1008_v7 = vmul.f32 1.442695, %v1007_v5  ;;  %v1005_v11 = vmul.f32 1.442695, %v1004_v10 }
 0x3d1   : > { %2819 = vpow2.f32 %v1008_v7 }
 0x3d2   : > { %v2025_v8 = vpop.permute.xlu0 %2024  ;;  %2821 = vpow2.f32 %v1005_v11 }
 0x3d3   : > { %2679 = vmatmul.mubr.msk.f32.vlgmr.msra.gmra.mxu0 %vm922_vm2, %v2025_v8  ;;  %v2210_v8 = vld [vmem:[#allocation14 + $0x18] sm:$0xff] }
 0x3d4   : > { %2694 = vmatprep.mubr.msk.f32.mxu0 %vm3110_vm1, %v3109_v16  ;;  %2687 = vmatpush3.msra.mxu0 %v2210_v8 }
 0x3d5   : > { %2688 = vmatprep.subr.mxu0 %v3109_v16 }
 0x3de   : > { %v2820_v9 = vpop.eup %2819 }
 0x3df   : > { %2654 = vmatmul.mubr.msk.f32.vlgmr.msra.gmra.mxu1 %vm922_vm2, %v2820_v9  ;;  %v2822_v17 = vpop.eup %2821  ;;  %v1011_v43 = vsel %vm922_vm2, %v2820_v9, 0.0  ;;  %v2209_v9 = vld [vmem:[#allocation14 + $0x10] sm:$0xff] }
 0x3e0   : > { %2657 = vmatpush3.xpose.msk.msra.mxu1 %vm922_vm2, %v1286_v51  ;;  %2658 = vmatprep.mubr.msk.f32.mxu1 %vm3110_vm1, %v3109_v16  ;;  %v3437_v18 = vmul.f32 0.0, %v2822_v17  ;;  %v2207_v17 = vld [vmem:[#allocation14] sm:$0xff] }
 0x3e1   : > { %2661 = vmatprep.subr.mxu1 %v3109_v16  ;;  %2689 = vmatpush3.msra.mxu0 %v2209_v9 }
 0x3e2   : > { %2690 = vmatprep.subr.mxu0 %v3109_v16 }
 0x3e3   : > { %2659 = vmatmul.mubr.msk.f32.vlgmr.msra.gmra.mxu1 %vm922_vm2, %v1283_v6 }
 0x3e4   : > { %2663 = vmatprep.mubr.msk.f32.mxu1 %vm3110_vm1, %v3109_v16 }
 0x442   : > { %v1735_v26 = vpop.xlane.xlu0 %1734 }
 0x443   : > { %v1736_v27 = vmax.f32 %v1735_v26, -1e+30 }
 0x445   : > { %v1740_v28 = vsub.f32 %v1732_v63, %v1736_v27  ;;  %v1737_v44 = vsub.f32 -1e+30, %v1736_v27 }
 0x447   : > { %v1741_v29 = vmul.f32 1.442695, %v1740_v28  ;;  %v1738_v45 = vmul.f32 1.442695, %v1737_v44 }
 0x449   : > { %2823 = vpow2.f32 %v1741_v29 }
 0x456   : > { %v2824_v30 = vpop.eup %2823 }
 0x457   : > { %v1744_v31 = vsel %vm922_vm2, %v2824_v30, 0.0 }
 0x493   : > { %v2099_v12 = vpop.f32.mrf.mxu0 }
 0x494   : > { %v2103_v13 = vsel %vm735_vm3, %v2099_v12, -1e+30 }
 0x495   : > { %v2680_v14 = vpop.f32.mrf.mxu0  ;;  %v2104_v15 = vsel %vm922_vm2, %v2103_v13, -inf }
 0x496   : > { %2105 = vmax.xlane.f32.xlu0 %v2104_v15 }
 0x49f   : > { %v1085_v19 = vpop.f32.mrf.mxu1 }
 0x4a0   : > { %v3440_v20 = vadd.f32 %v1085_v19, %v3437_v18 }
 0x4a1   : > { %v2655_v21 = vpop.f32.mrf.mxu1 }
 0x4a3   : > { %v1357_v22 = vpop.f32.mrf.mxu1 }
 0x4a4   : > { %v1361_v23 = vsel %vm735_vm3, %v1357_v22, -1e+30 }
 0x4a5   : > { %v2660_v24 = vpop.f32.mrf.mxu1  ;;  %v1362_v25 = vsel %vm922_vm2, %v1361_v23, -inf }
 0x4a6   : > { %1363 = vmax.xlane.f32.xlu1 %v1362_v25 }
 0x4ac   : > { %1379 = vrot.lane.b32.xlu0 %v3402_v50, %s3111_s17 }
 0x4b7   : > { %1750 = vrot.lane.b32.xlu1 %v3402_v50, %s3112_s20 }
 0x4bb   : > { %2121 = vrot.lane.b32.xlu1 %v3402_v50, %s3113_s15 }
 0x4cb   : > { %1745 = vadd.xlane.f32.xlu0 %v1744_v31 }
 0x51f   : > { %v2106_v32 = vpop.xlane.xlu0 %2105 }
 0x520   : > { %v2107_v33 = vmax.f32 %v2106_v32, -1e+30 }
 0x522   : > { %v2111_v34 = vsub.f32 %v2103_v13, %v2107_v33  ;;  %v2108_v54 = vsub.f32 -1e+30, %v2107_v33  ;;  %v2208_v13 = vld [vmem:[#allocation14 + $0x8] sm:$0xff] }
 0x523   : > { %v1380_v35 = vpop.permute.xlu0 %1379  ;;  %2691 = vmatpush3.msra.mxu0 %v2208_v13 }
 0x524   : > { %v2112_v36 = vmul.f32 1.442695, %v2111_v34  ;;  %2662 = vmatpush3.msra.mxu1 %v1380_v35  ;;  %v2109_v55 = vmul.f32 1.442695, %v2108_v54  ;;  %2692 = vmatprep.subr.mxu0 %v3109_v16 }
 0x525   : > { %2671 = vmatprep.subr.mxu1 %v3109_v16  ;;  %2693 = vmatpush3.msra.mxu0 %v2207_v17 }
 0x526   : > { %2825 = vpow2.f32 %v2112_v36 }
 0x52f   : > { %v1364_v37 = vpop.xlane.xlu1 %1363 }
 0x530   : > { %v1365_v38 = vmax.f32 %v1364_v37, -1e+30 }
 0x532   : > { %v1369_v39 = vsub.f32 %v1361_v23, %v1365_v38  ;;  %v1366_v0 = vsub.f32 -1e+30, %v1365_v38 }
 0x533   : > { %v2826_v40 = vpop.eup %2825  ;;  %v1751_v46 = vpop.permute.xlu1 %1750 }
 0x534   : > { %v1370_v41 = vmul.f32 1.442695, %v1369_v39  ;;  %v2115_v42 = vsel %vm922_vm2, %v2826_v40, 0.0  ;;  %v1367_v2 = vmul.f32 1.442695, %v1366_v0 }
 0x535   : > { %2116 = vadd.xlane.f32.xlu0 %v2115_v42 }
 0x536   : > { %2827 = vpow2.f32 %v1370_v41 }
 0x537   : > { %2829 = vpow2.f32 %v1738_v45  ;;  %v2122_v49 = vpop.permute.xlu1 %2121 }
 0x538   : > { %2831 = vpow2.f32 %v2109_v55 }
 0x539   : > { %1012 = vadd.xlane.f32.xlu0 %v1011_v43 }
 0x543   : > { %v2828_v47 = vpop.eup %2827 }
 0x544   : > { %2664 = vmatmul.mubr.msk.f32.vlgmr.msra.gmra.mxu1 %vm922_vm2, %v2828_v47  ;;  %v1373_v48 = vsel %vm922_vm2, %v2828_v47, 0.0  ;;  %v2830_v50 = vpop.eup %2829 }
 0x545   : > { %2672 = vmatpush3.msra.mxu1 %v1751_v46  ;;  %1374 = vadd.xlane.f32.xlu1 %v1373_v48  ;;  %v1743_v51 = vmul.f32 0.0, %v2830_v50  ;;  %v2832_v56 = vpop.eup %2831 }
 0x546   : > { %2673 = vmatprep.mubr.msk.f32.mxu1 %vm3110_vm1, %v3109_v16  ;;  %2681 = vmatprep.subr.mxu1 %v3109_v16  ;;  %v2114_v57 = vmul.f32 0.0, %v2832_v56 }
 0x548   : > { %2674 = vmatmul.mubr.msk.f32.vlgmr.msra.gmra.mxu1 %vm922_vm2, %v2824_v30 }
 0x549   : > { %2682 = vmatpush3.msra.mxu1 %v2122_v49  ;;  %2683 = vmatprep.mubr.msk.f32.mxu1 %vm3110_vm1, %v3109_v16 }
 0x54c   : > { %2684 = vmatmul.mubr.msk.f32.vlgmr.msra.gmra.mxu1 %vm922_vm2, %v2826_v40 }
 0x554   : > { %v1746_v52 = vpop.xlane.xlu0 %1745 }
 0x555   : > { %v1747_v53 = vadd.f32 %v1746_v52, %v1743_v51 }
 0x5be   : > { %v2117_v58 = vpop.xlane.xlu0 %2116 }
 0x5bf   : > { %v2118_v59 = vadd.f32 %v2117_v58, %v2114_v57 }
 0x5c2   : > { %v1013_v60 = vpop.xlane.xlu0 %1012 }
 0x5c3   : > { %v1014_v61 = vadd.f32 %v1013_v60, %v3437_v18 }
 0x5c5   : > { %2833 = vrcp.f32 %v1014_v61 }
 0x5c6   : > { %2835 = vpow2.f32 %v1367_v2 }
 0x5ce   : > { %v1375_v4 = vpop.xlane.xlu1 %1374 }
 0x5d2   : > { %v2834_v62 = vpop.eup %2833 }
 0x5d3   : > { %v1091_v63 = vmul.f32 %v2834_v62, %v3440_v20  ;;  %v2836_v3 = vpop.eup %2835 }
 0x5d4   : > { %v1372_v5 = vmul.f32 0.0, %v2836_v3 }
 0x5d5   : > { %1092 = vst.msk [vmem:[#allocation4] sm:$0xff] %vm922_vm2, %v1091_v63 }
 0x5d6   : > { %v1376_v6 = vadd.f32 %v1375_v4, %v1372_v5 }
 0x5d8   : > { %2837 = vrcp.f32 %v1376_v6 }
 0x5d9   : > { %2839 = vrcp.f32 %v1747_v53 }
 0x5da   : > { %2841 = vrcp.f32 %v2118_v59 }
 0x5e5   : > { %v2838_v11 = vpop.eup %2837 }
 0x5e6   : > { %v2840_v19 = vpop.eup %2839 }
 0x5e7   : > { %v2842_v24 = vpop.eup %2841 }
 0x604   : > { %v1451_v7 = vpop.f32.mrf.mxu1 }
 0x605   : > { %v1455_v10 = vadd.f32 %v1451_v7, %v1372_v5 }
 0x606   : > { %v2665_v12 = vpop.f32.mrf.mxu1 }
 0x607   : > { %v1457_v14 = vmul.f32 %v2838_v11, %v1455_v10 }
 0x608   : > { %v1822_v15 = vpop.f32.mrf.mxu1 }
 0x609   : > { %v1826_v18 = vadd.f32 %v1822_v15, %v1743_v51  ;;  %1459 = vrot.lane.b32.xlu1 %v1457_v14, %s3114_s26 }
 0x60a   : > { %v2675_v20 = vpop.f32.mrf.mxu1 }
 0x60b   : > { %v1828_v21 = vmul.f32 %v2840_v19, %v1826_v18 }
 0x60c   : > { %v2193_v22 = vpop.f32.mrf.mxu1 }
 0x60d   : > { %v2197_v23 = vadd.f32 %v2193_v22, %v2114_v57  ;;  %1830 = vrot.lane.b32.xlu0 %v1828_v21, %s3115_s19 }
 0x60e   : > { %v2685_v25 = vpop.f32.mrf.mxu1 }
 0x60f   : > { %v2199_v26 = vmul.f32 %v2842_v24, %v2197_v23 }
 0x611   : > { %2201 = vrot.lane.b32.xlu1 %v2199_v26, %s3116_s4 }
 0x67b   : > { %v1460_v27 = vpop.permute.xlu1 %1459 }
 0x67c   : > { %1463 = vst.msk [vmem:[#allocation4] sm:$0xff] %vm1462_vm4, %v1460_v27 }
 0x67f   : > { %v1831_v28 = vpop.permute.xlu0 %1830 }
 0x680   : > { %1834 = vst.msk [vmem:[#allocation4] sm:$0xff] %vm1833_vm5, %v1831_v28 }
 0x683   : > { %v2202_v16 = vpop.permute.xlu1 %2201 }
 0x684   : > { %2205 = vst.msk [vmem:[#allocation4] sm:$0xff] %vm2204_vm6, %v2202_v16 }
 0x68b   : > { %v2206_v29 = vld [vmem:[#allocation4] sm:$0xff] }
 0x68c   : > { %2695 = vmatmul.mubr.msk.f32.vlgmr.msra.gmra.mxu0 %vm438_vm0, %v2206_v29 }
 0x74c   : > { %v2280_v30 = vpop.f32.mrf.mxu0 }
 0x74d   : > { %v2281_v31 = vadd.f32 %v2280_v30, %v3355_v1 }
 0x74e   : > { %v2696_v32 = vpop.f32.mrf.mxu0 }
 0x74f   : > { %2284 = vst.msk [vmem:[%s432_s0] sm:$0xff] %vm438_vm0, %v2281_v31 }
 0x750   : > { %3016 = shalt.err (!%p3013_p1)
}
 0x751   : > { %s3017_s24 = scalar_lea.hbm %s3476_s12, 128  ;;  %s3021_s20 = scalar_lea.hbm %s3527_s8, 256 }
 0x752   : > { %p3018_p3 = scmp.ne.s32.totalorder %s3476_s12, %s3017_s24  ;;  %p3022_p7 = scmp.lt.s32.totalorder %s3476_s12, %s3527_s8 }
 0x753   : > { %p3023_p12 = scmp.lt.s32.totalorder %s3021_s20, %s3017_s24 }
 0x754   : > { %p3019_p9 = pnand %p3018_p3, %p3281_p2 }
 0x755   : > { %p3024_p0 = por %p3023_p12, %p3022_p7 }
 0x756   : > { %p3020_p10 = pneg %p3019_p9 }
 0x758   : > { %p3025_p6 = pnand %p3024_p0, %p3020_p10 }
 0x75a   : > { %3028 = shalt.err (!%p3025_p6)
}
 0x75b   : > { %2717 = dma.vmem_to_hbm [thread:$0]  (%p3281_p2), %s2301_s23, 128, %s3476_s12, %s2286_s11  }
 0x75c PF: > { %s2312_s19 = sand.u32 1, %s3079_s27   ;;  %p3554_p5 = scmp.ge.s32.totalorder %s3099_s10, 2 }
 0x75d   : > { %s2313_s4 = scalar_lea.sflag [#allocation7], %s2312_s19 }
 0x75e   : > { %p2740_p11 = pnand %p3554_p5, %p3288_p8 }
 0x760   : > { %p2741_p13 = pneg %p2740_p11 }
 0x762   : > { %3074 = dma.done.wait (%p2741_p13), %s2313_s4, 128  }
 0x763   : > { %3076 = vsyncadd (%p2741_p13), %s2313_s4, 4294967168  ;;  %s29_s10 = sadd.s32 1, %s3099_s10   ;;  %s3555_s14 = sld [smem:[#allocation23_spill]] }
 0x764   : > { %p26_p4 = scmp.ge.s32.totalorder %s29_s10, 4   ;;  %s3556_s27 = smov %s3083_s28 }
 0x765   : > { %s3557_s28 = smov %s3087_s29  ;;  %s3558_s29 = smov %s3286_s16 }
 0x766   : > { %s3559_s30 = smov %s3095_s9  ;;  %28 = sbr.rel (!%p26_p4) target bundleno = 16 (0x10), region = 212 }
 0x769   : > { %s3560_s9 = smov %s3555_s14 }
 0x76b   :  { %2318 = vsyncpa [#allocation6], 1 }
 0x76c   :  { %2320 = vsyncpa [#allocation6 + $0x1], 1 }
 0x76d   :  { %2321 = vsyncpa [#allocation9], 1 }
 0x76e   :  { %2323 = vsyncpa [#allocation9 + $0x1], 1 }
 0x76f   :  { %2324 = vsyncpa [#allocation12], 1 }
 0x770   :  { %2325 = vsyncpa [#allocation15], 1 }
 0x771   :  { %2326 = vsyncpa [#allocation7], 1 }
 0x772   :  { %2328 = vsyncpa [#allocation7 + $0x1], 1 }

</bundles_post_ra>
